<compile_context>
chip_gen: v5e
topology: v5e:2x2
jax: 0.10.0
libtpu: 0.0.40
codegen_flags: <defaults>
</compile_context>

<pallas_src>
import functools

import jax
import jax.numpy as jnp
from jax.experimental import pallas as pl
from jax.experimental.pallas import tpu as pltpu

COMPUTE_DTYPE = jnp.bfloat16        # MXU-native streaming dtype (weights/activations)
TK_TARGET = 8192                    # target reduction-axis tile (multiple of 128)
TN_TARGET = 1280                    # target output-feature tile (multiple of 128)
MAX_W_TILE_BYTES = 8 * 1024 * 1024  # keep 2x weight tile well inside v7x's 64 MiB VMEM
VMEM_CAP_BYTES = 50 * 1024 * 1024   # scoped-VMEM cap that is safe on every generation


def _round_up(x, m):
    return ((x + m - 1) // m) * m


def _pick_dim_tile(d, target):
    """Pad `d` to a multiple of 128 only, then pick the largest tile (multiple of
    128, <= target) that divides the padded dim exactly.
    Example: 30000 -> (30080, 6016) with the K target, (30080, 640) with N."""
    d_pad = _round_up(d, 128)
    units = d_pad // 128
    max_units = max(1, target // 128)
    tile_units = max(u for u in range(1, units + 1)
                     if units % u == 0 and u <= max_units)
    return d_pad, tile_units * 128


def _shrink_tile(d_pad, tile):
    """Next smaller divisor-tile of d_pad (in units of 128)."""
    units = d_pad // 128
    cur = tile // 128
    smaller = max(u for u in range(1, cur) if units % u == 0)
    return smaller * 128


def _pick_tiles(fin, fout):
    """Padded dims + tile sizes for one weight; bounds the weight tile bytes."""
    k_pad, tk = _pick_dim_tile(fin, TK_TARGET)
    n_pad, tn = _pick_dim_tile(fout, TN_TARGET)
    itemsize = jnp.dtype(COMPUTE_DTYPE).itemsize
    while tk * tn * itemsize > MAX_W_TILE_BYTES and tn > 128:
        tn = _shrink_tile(n_pad, tn)
    while tk * tn * itemsize > MAX_W_TILE_BYTES and tk > 128:
        tk = _shrink_tile(k_pad, tk)
    return k_pad, tk, n_pad, tn


# ---------------------------------------------------------------------------
# Tiled Linear + Sigmoid kernel (scales to K = N = 30000)
# ---------------------------------------------------------------------------
def _linear_sigmoid_kernel(x_ref, w_ref, b_ref, o_ref, acc_ref, *, tk):
    k = pl.program_id(1)

    @pl.when(k == 0)
    def _init():
        acc_ref[...] = jnp.zeros_like(acc_ref)

    # Activations are VMEM-resident for the whole layer; slice the current
    # K-slab in place (lane-aligned dynamic offset, no re-DMA of x per step).
    start = pl.multiple_of(k * tk, 128)
    acc_ref[...] += jnp.dot(x_ref[:, pl.ds(start, tk)], w_ref[...],
                            preferred_element_type=jnp.float32)

    @pl.when(k == pl.num_programs(1) - 1)
    def _finalize():
        o_ref[...] = jax.nn.sigmoid(acc_ref[...] + b_ref[...]).astype(o_ref.dtype)


def linear_sigmoid(x, w_tiles, b, *, out_dtype):
    """out = sigmoid(x @ W + b).

    x:        (M, K_pad) bf16 activations.
    w_tiles:  (kt, nt, tk, tn) bf16 pre-transposed, zero-padded, tile-major
              weight (so each (tk, tn) tile is one contiguous HBM burst).
    b:        (1, N_pad) f32 bias.
    """
    M, K = x.shape
    kt, nt, tk, tn = w_tiles.shape
    assert K == kt * tk, (K, kt, tk)
    N = nt * tn
    grid = (nt, kt)  # N tiles parallel (megacore-shardable), K reduction last.

    # Explicit VMEM budget from the actual buffers: resident x (assume 2x to be
    # safe), double-buffered weight tile + bias, f32 accumulator, output tiles.
    est = (2 * M * K * x.dtype.itemsize
           + 2 * tk * tn * w_tiles.dtype.itemsize
           + 2 * tn * 4
           + M * tn * 4
           + 2 * M * tn * jnp.dtype(out_dtype).itemsize)
    vmem_limit = int(min(VMEM_CAP_BYTES, max(32 * 1024 * 1024, int(est * 1.5))))

    kernel = functools.partial(_linear_sigmoid_kernel, tk=tk)
    return pl.pallas_call(
        kernel,
        out_shape=jax.ShapeDtypeStruct((M, N), out_dtype),
        grid_spec=pltpu.PrefetchScalarGridSpec(
            num_scalar_prefetch=0,
            grid=grid,
            in_specs=[
                # Whole activation slab, resident in VMEM across the grid.
                pl.BlockSpec((M, K), lambda j, k: (0, 0)),
                # One contiguous tile-major weight tile per step.
                pl.BlockSpec((None, None, tk, tn), lambda j, k: (k, j, 0, 0)),
                # f32 bias tile for the current N block.
                pl.BlockSpec((1, tn), lambda j, k: (0, j)),
            ],
            out_specs=pl.BlockSpec((M, tn), lambda j, k: (0, j)),
            scratch_shapes=[pltpu.VMEM((M, tn), jnp.float32)],
        ),
        compiler_params=pltpu.CompilerParams(
            dimension_semantics=("parallel", "arbitrary"),
            vmem_limit_bytes=vmem_limit,
        ),
    )(x, w_tiles, b)


# ---------------------------------------------------------------------------
# Fully-fused 5-layer kernel for small configs (all weights resident in VMEM)
# ---------------------------------------------------------------------------
def _fused_mlp5_kernel(x_ref, w1, b1, w2, b2, w3, b3, w4, b4, w5, b5, o_ref):
    layers = ((w1, b1), (w2, b2), (w3, b3), (w4, b4), (w5, b5))
    h = x_ref[...]
    for i, (w_ref, b_ref) in enumerate(layers):
        z = jnp.dot(h, w_ref[...], preferred_element_type=jnp.float32) + b_ref[...]
        a = jax.nn.sigmoid(z)
        h = a if i == len(layers) - 1 else a.astype(COMPUTE_DTYPE)
    o_ref[...] = h.astype(o_ref.dtype)


def fused_mlp5(x, params, out_dtype):
    M, K0 = x.shape
    n_last = params[-1][0].shape[1] * params[-1][0].shape[3]
    inputs = [x]
    in_specs = [pl.BlockSpec((M, K0), lambda i: (0, 0))]
    total = x.size * x.dtype.itemsize
    for w, b in params:
        _, _, kp, npad = w.shape
        inputs += [w, b]
        in_specs += [pl.BlockSpec((None, None, kp, npad), lambda i: (0, 0, 0, 0)),
                     pl.BlockSpec(b.shape, lambda i: (0, 0))]
        total += w.size * w.dtype.itemsize + b.size * b.dtype.itemsize
    vmem_limit = int(min(VMEM_CAP_BYTES, max(32 * 1024 * 1024, 3 * total)))
    return pl.pallas_call(
        _fused_mlp5_kernel,
        out_shape=jax.ShapeDtypeStruct((M, n_last), out_dtype),
        grid_spec=pltpu.PrefetchScalarGridSpec(
            num_scalar_prefetch=0,
            grid=(1,),
            in_specs=in_specs,
            out_specs=pl.BlockSpec((M, n_last), lambda i: (0, 0)),
        ),
        compiler_params=pltpu.CompilerParams(
            dimension_semantics=("arbitrary",),
            vmem_limit_bytes=vmem_limit,
        ),
    )(*inputs)


def can_fuse(params, batch):
    """Fuse only when every weight is a single tile and everything fits in a
    VMEM budget that is safe even on v7x (64 MiB/TC)."""
    if len(params) != 5:
        return False
    for w, _ in params:
        if w.shape[0] != 1 or w.shape[1] != 1:   # must be single-tile weights
            return False
    for (wa, _), (wb, _) in zip(params[:-1], params[1:]):
        if wa.shape[1] * wa.shape[3] != wb.shape[0] * wb.shape[2]:
            return False
    weight_bytes = sum(w.size * w.dtype.itemsize + b.size * b.dtype.itemsize
                       for w, b in params)
    act_bytes = 4 * batch * max(w.shape[2] for w, _ in params) * 4
    return weight_bytes + act_bytes <= 16 * 1024 * 1024


# ---------------------------------------------------------------------------
# Parameters & forward pass
# ---------------------------------------------------------------------------
def init_linear_params(key, fin, fout):
    """PyTorch nn.Linear default init: U(-1/sqrt(fan_in), 1/sqrt(fan_in))."""
    kw, kb = jax.random.split(key)
    bound = 1.0 / (fin ** 0.5)
    w = jax.random.uniform(kw, (fout, fin), jnp.float32, -bound, bound)
    b = jax.random.uniform(kb, (fout,), jnp.float32, -bound, bound)
    return w, b


def make_params(key, layer_sizes, dtype=COMPUTE_DTYPE):
    keys = jax.random.split(key, len(layer_sizes))
    kernel_params, ref_params = [], []
    for k, (fin, fout) in zip(keys, layer_sizes):
        w, b = init_linear_params(k, fin, fout)
        ref_params.append((w, b))
        k_pad, tk, n_pad, tn = _pick_tiles(fin, fout)
        # Transpose + zero-pad + bf16-cast + tile-major reorder ONCE here,
        # outside the jitted forward.  Padded K-rows are ZERO so that the
        # sigmoid(0)=0.5 values in padded activation columns of the previous
        # layer contribute nothing (see correctness note at top of file).
        w_t = jnp.zeros((k_pad, n_pad), dtype).at[:fin, :fout].set(w.T.astype(dtype))
        w_tiles = (w_t.reshape(k_pad // tk, tk, n_pad // tn, tn)
                       .transpose(0, 2, 1, 3))                    # (kt, nt, tk, tn)
        b_p = jnp.zeros((1, n_pad), jnp.float32).at[0, :fout].set(b)
        kernel_params.append((w_tiles, b_p))
    # Padded chain dims must line up exactly (both are round_up(dim, 128)).
    for (wa, _), (wb, _) in zip(kernel_params[:-1], kernel_params[1:]):
        assert wa.shape[1] * wa.shape[3] == wb.shape[0] * wb.shape[2], \
            "padded N of layer i must equal padded K of layer i+1"
    return kernel_params, ref_params


@functools.partial(jax.jit, static_argnames=("out_features", "fuse"))
def nonlin_regression1_forward(x, params, *, out_features, fuse=False):
    k0 = params[0][0].shape[0] * params[0][0].shape[2]   # padded K of first layer
    h = x.astype(COMPUTE_DTYPE)
    if h.shape[1] != k0:
        assert h.shape[1] < k0
        h = jnp.pad(h, ((0, 0), (0, k0 - h.shape[1])))   # zero-pad input features once
    if fuse:
        out = fused_mlp5(h, params, jnp.float32)
    else:
        last = len(params) - 1
        for i, (w_tiles, b) in enumerate(params):
            h = linear_sigmoid(
                h, w_tiles, b,
                out_dtype=jnp.float32 if i == last else COMPUTE_DTYPE)
        out = h
    return out[:, :out_features]


if __name__ == "__main__":
    # Small shapes consistent with the module (the real model is
    # 784 -> 30000 -> 30000 -> 30000 -> 30000 -> output).
    batch = 8
    input_size = 784
    h1 = h2 = h3 = h4 = 256
    output_size = 10

    key = jax.random.PRNGKey(0)
    kx, kp = jax.random.split(key)
    x = jax.random.normal(kx, (batch, input_size), jnp.float32)

    sizes = [(input_size, h1), (h1, h2), (h2, h3), (h3, h4), (h4, output_size)]
    params, ref_params = make_params(kp, sizes)

    # Exercise both code paths: fused single-call kernel (small config) and the
    # general tiled/accumulating kernel (the one that scales to 30000-wide layers).
    fuse = can_fuse(params, batch)
    out_fused = nonlin_regression1_forward(x, params, out_features=output_size, fuse=fuse)
    out_tiled = nonlin_regression1_forward(x, params, out_features=output_size, fuse=False)
    jax.block_until_ready((out_fused, out_tiled))

    # Pure-JAX f32 reference (unpadded weights).
    ref = x
    for w, b in ref_params:
        ref = jax.nn.sigmoid(ref @ w.T + b)

    assert out_tiled.shape == (batch, output_size)
    assert out_fused.shape == (batch, output_size)
    assert jnp.allclose(out_tiled, ref, atol=2e-2, rtol=0), "tiled path mismatch"
    assert jnp.allclose(out_fused, ref, atol=2e-2, rtol=0), "fused path mismatch"
    assert jnp.allclose(out_fused, out_tiled, atol=5e-3, rtol=0), "fused vs tiled mismatch"

    print("KERNEL_OK")
</pallas_src>

<mosaic_0001>
module attributes {stable_mosaic.version = 11 : i64} {
  func.func @_fused_mlp5_kernel(%arg0: i32, %arg1: memref<8x896xbf16, #tpu.memory_space<vmem>>, %arg2: memref<1x1x896x256xbf16, #tpu.memory_space<vmem>>, %arg3: memref<1x256xf32, #tpu.memory_space<vmem>>, %arg4: memref<1x1x256x256xbf16, #tpu.memory_space<vmem>>, %arg5: memref<1x256xf32, #tpu.memory_space<vmem>>, %arg6: memref<1x1x256x256xbf16, #tpu.memory_space<vmem>>, %arg7: memref<1x256xf32, #tpu.memory_space<vmem>>, %arg8: memref<1x1x256x256xbf16, #tpu.memory_space<vmem>>, %arg9: memref<1x256xf32, #tpu.memory_space<vmem>>, %arg10: memref<1x1x256x128xbf16, #tpu.memory_space<vmem>>, %arg11: memref<1x128xf32, #tpu.memory_space<vmem>>, %arg12: memref<8x128xf32, #tpu.memory_space<vmem>>) attributes {dimension_semantics = [#tpu.dimension_semantics<arbitrary>], iteration_bounds = array<i64: 1>, scalar_prefetch = 0 : i64, scratch_operands = 0 : i64, tpu.core_type = #tpu.core_type<tc>, window_params = [{pipeline_mode = #tpu.pipeline_mode<synchronous>, transform_indices = @transform_0, window_bounds = array<i64: 8, 896>}, {pipeline_mode = #tpu.pipeline_mode<synchronous>, transform_indices = @transform_1, window_bounds = array<i64: 1, 1, 896, 256>}, {pipeline_mode = #tpu.pipeline_mode<synchronous>, transform_indices = @transform_2, window_bounds = array<i64: 1, 256>}, {pipeline_mode = #tpu.pipeline_mode<synchronous>, transform_indices = @transform_3, window_bounds = array<i64: 1, 1, 256, 256>}, {pipeline_mode = #tpu.pipeline_mode<synchronous>, transform_indices = @transform_4, window_bounds = array<i64: 1, 256>}, {pipeline_mode = #tpu.pipeline_mode<synchronous>, transform_indices = @transform_5, window_bounds = array<i64: 1, 1, 256, 256>}, {pipeline_mode = #tpu.pipeline_mode<synchronous>, transform_indices = @transform_6, window_bounds = array<i64: 1, 256>}, {pipeline_mode = #tpu.pipeline_mode<synchronous>, transform_indices = @transform_7, window_bounds = array<i64: 1, 1, 256, 256>}, {pipeline_mode = #tpu.pipeline_mode<synchronous>, transform_indices = @transform_8, window_bounds = array<i64: 1, 256>}, {pipeline_mode = #tpu.pipeline_mode<synchronous>, transform_indices = @transform_9, window_bounds = array<i64: 1, 1, 256, 128>}, {pipeline_mode = #tpu.pipeline_mode<synchronous>, transform_indices = @transform_10, window_bounds = array<i64: 1, 128>}, {pipeline_mode = #tpu.pipeline_mode<synchronous>, transform_indices = @transform_11, window_bounds = array<i64: 8, 128>}]} {
    %c0 = arith.constant 0 : index
    %c0_0 = arith.constant 0 : index
    %0 = vector.load %arg1[%c0, %c0_0] : memref<8x896xbf16, #tpu.memory_space<vmem>>, vector<8x896xbf16>
    %c0_1 = arith.constant 0 : index
    %c0_2 = arith.constant 0 : index
    %c0_3 = arith.constant 0 : index
    %c0_4 = arith.constant 0 : index
    %1 = vector.load %arg2[%c0_1, %c0_2, %c0_3, %c0_4] : memref<1x1x896x256xbf16, #tpu.memory_space<vmem>>, vector<1x1x896x256xbf16>
    %2 = vector.shape_cast %1 : vector<1x1x896x256xbf16> to vector<896x256xbf16>
    %cst = arith.constant dense<0.000000e+00> : vector<8x256xf32>
    %3 = tpu.matmul %0, %2, %cst {dimension_numbers = #tpu.dot_dimension_numbers<[1], [0], [0], [1], [0, 0, 1, 1], [], []>} : vector<8x896xbf16>, vector<896x256xbf16>, vector<8x256xf32> -> vector<8x256xf32>
    %c0_5 = arith.constant 0 : index
    %c0_6 = arith.constant 0 : index
    %4 = vector.load %arg3[%c0_5, %c0_6] : memref<1x256xf32, #tpu.memory_space<vmem>>, vector<1x256xf32>
    %5 = vector.broadcast %4 : vector<1x256xf32> to vector<8x256xf32>
    %6 = arith.addf %3, %5 : vector<8x256xf32>
    %7 = arith.negf %6 : vector<8x256xf32>
    %8 = math.exp %7 : vector<8x256xf32>
    %cst_7 = arith.constant 1.000000e+00 : f32
    %9 = vector.broadcast %cst_7 : f32 to vector<8x256xf32>
    %10 = arith.addf %9, %8 : vector<8x256xf32>
    %11 = arith.divf %9, %10 : vector<8x256xf32>
    %12 = arith.truncf %11 : vector<8x256xf32> to vector<8x256xbf16>
    %c0_8 = arith.constant 0 : index
    %c0_9 = arith.constant 0 : index
    %c0_10 = arith.constant 0 : index
    %c0_11 = arith.constant 0 : index
    %13 = vector.load %arg4[%c0_8, %c0_9, %c0_10, %c0_11] : memref<1x1x256x256xbf16, #tpu.memory_space<vmem>>, vector<1x1x256x256xbf16>
    %14 = vector.shape_cast %13 : vector<1x1x256x256xbf16> to vector<256x256xbf16>
    %cst_12 = arith.constant dense<0.000000e+00> : vector<8x256xf32>
    %15 = tpu.matmul %12, %14, %cst_12 {dimension_numbers = #tpu.dot_dimension_numbers<[1], [0], [0], [1], [0, 0, 1, 1], [], []>} : vector<8x256xbf16>, vector<256x256xbf16>, vector<8x256xf32> -> vector<8x256xf32>
    %c0_13 = arith.constant 0 : index
    %c0_14 = arith.constant 0 : index
    %16 = vector.load %arg5[%c0_13, %c0_14] : memref<1x256xf32, #tpu.memory_space<vmem>>, vector<1x256xf32>
    %17 = vector.broadcast %16 : vector<1x256xf32> to vector<8x256xf32>
    %18 = arith.addf %15, %17 : vector<8x256xf32>
    %19 = arith.negf %18 : vector<8x256xf32>
    %20 = math.exp %19 : vector<8x256xf32>
    %cst_15 = arith.constant 1.000000e+00 : f32
    %21 = vector.broadcast %cst_15 : f32 to vector<8x256xf32>
    %22 = arith.addf %21, %20 : vector<8x256xf32>
    %23 = arith.divf %21, %22 : vector<8x256xf32>
    %24 = arith.truncf %23 : vector<8x256xf32> to vector<8x256xbf16>
    %c0_16 = arith.constant 0 : index
    %c0_17 = arith.constant 0 : index
    %c0_18 = arith.constant 0 : index
    %c0_19 = arith.constant 0 : index
    %25 = vector.load %arg6[%c0_16, %c0_17, %c0_18, %c0_19] : memref<1x1x256x256xbf16, #tpu.memory_space<vmem>>, vector<1x1x256x256xbf16>
    %26 = vector.shape_cast %25 : vector<1x1x256x256xbf16> to vector<256x256xbf16>
    %cst_20 = arith.constant dense<0.000000e+00> : vector<8x256xf32>
    %27 = tpu.matmul %24, %26, %cst_20 {dimension_numbers = #tpu.dot_dimension_numbers<[1], [0], [0], [1], [0, 0, 1, 1], [], []>} : vector<8x256xbf16>, vector<256x256xbf16>, vector<8x256xf32> -> vector<8x256xf32>
    %c0_21 = arith.constant 0 : index
    %c0_22 = arith.constant 0 : index
    %28 = vector.load %arg7[%c0_21, %c0_22] : memref<1x256xf32, #tpu.memory_space<vmem>>, vector<1x256xf32>
    %29 = vector.broadcast %28 : vector<1x256xf32> to vector<8x256xf32>
    %30 = arith.addf %27, %29 : vector<8x256xf32>
    %31 = arith.negf %30 : vector<8x256xf32>
    %32 = math.exp %31 : vector<8x256xf32>
    %cst_23 = arith.constant 1.000000e+00 : f32
    %33 = vector.broadcast %cst_23 : f32 to vector<8x256xf32>
    %34 = arith.addf %33, %32 : vector<8x256xf32>
    %35 = arith.divf %33, %34 : vector<8x256xf32>
    %36 = arith.truncf %35 : vector<8x256xf32> to vector<8x256xbf16>
    %c0_24 = arith.constant 0 : index
    %c0_25 = arith.constant 0 : index
    %c0_26 = arith.constant 0 : index
    %c0_27 = arith.constant 0 : index
    %37 = vector.load %arg8[%c0_24, %c0_25, %c0_26, %c0_27] : memref<1x1x256x256xbf16, #tpu.memory_space<vmem>>, vector<1x1x256x256xbf16>
    %38 = vector.shape_cast %37 : vector<1x1x256x256xbf16> to vector<256x256xbf16>
    %cst_28 = arith.constant dense<0.000000e+00> : vector<8x256xf32>
    %39 = tpu.matmul %36, %38, %cst_28 {dimension_numbers = #tpu.dot_dimension_numbers<[1], [0], [0], [1], [0, 0, 1, 1], [], []>} : vector<8x256xbf16>, vector<256x256xbf16>, vector<8x256xf32> -> vector<8x256xf32>
    %c0_29 = arith.constant 0 : index
    %c0_30 = arith.constant 0 : index
    %40 = vector.load %arg9[%c0_29, %c0_30] : memref<1x256xf32, #tpu.memory_space<vmem>>, vector<1x256xf32>
    %41 = vector.broadcast %40 : vector<1x256xf32> to vector<8x256xf32>
    %42 = arith.addf %39, %41 : vector<8x256xf32>
    %43 = arith.negf %42 : vector<8x256xf32>
    %44 = math.exp %43 : vector<8x256xf32>
    %cst_31 = arith.constant 1.000000e+00 : f32
    %45 = vector.broadcast %cst_31 : f32 to vector<8x256xf32>
    %46 = arith.addf %45, %44 : vector<8x256xf32>
    %47 = arith.divf %45, %46 : vector<8x256xf32>
    %48 = arith.truncf %47 : vector<8x256xf32> to vector<8x256xbf16>
    %c0_32 = arith.constant 0 : index
    %c0_33 = arith.constant 0 : index
    %c0_34 = arith.constant 0 : index
    %c0_35 = arith.constant 0 : index
    %49 = vector.load %arg10[%c0_32, %c0_33, %c0_34, %c0_35] : memref<1x1x256x128xbf16, #tpu.memory_space<vmem>>, vector<1x1x256x128xbf16>
    %50 = vector.shape_cast %49 : vector<1x1x256x128xbf16> to vector<256x128xbf16>
    %cst_36 = arith.constant dense<0.000000e+00> : vector<8x128xf32>
    %51 = tpu.matmul %48, %50, %cst_36 {dimension_numbers = #tpu.dot_dimension_numbers<[1], [0], [0], [1], [0, 0, 1, 1], [], []>} : vector<8x256xbf16>, vector<256x128xbf16>, vector<8x128xf32> -> vector<8x128xf32>
    %c0_37 = arith.constant 0 : index
    %c0_38 = arith.constant 0 : index
    %52 = vector.load %arg11[%c0_37, %c0_38] : memref<1x128xf32, #tpu.memory_space<vmem>>, vector<1x128xf32>
    %53 = vector.broadcast %52 : vector<1x128xf32> to vector<8x128xf32>
    %54 = arith.addf %51, %53 : vector<8x128xf32>
    %55 = arith.negf %54 : vector<8x128xf32>
    %56 = math.exp %55 : vector<8x128xf32>
    %cst_39 = arith.constant 1.000000e+00 : f32
    %57 = vector.broadcast %cst_39 : f32 to vector<8x128xf32>
    %58 = arith.addf %57, %56 : vector<8x128xf32>
    %59 = arith.divf %57, %58 : vector<8x128xf32>
    %c0_40 = arith.constant 0 : index
    %c0_41 = arith.constant 0 : index
    %60 = vector.load %arg12[%c0_40, %c0_41] : memref<8x128xf32, #tpu.memory_space<vmem>>, vector<8x128xf32>
    tpu.vector_store %arg12[%c0_40, %c0_41], %59 {strides = array<i32>} : memref<8x128xf32, #tpu.memory_space<vmem>>, vector<8x128xf32>,
    return
  }
  func.func @transform_0(%arg0: i32) -> (i32, i32) {
    %c0_i32 = arith.constant 0 : i32
    %c0_i32_0 = arith.constant 0 : i32
    %c0_i32_1 = arith.constant 0 : i32
    return %c0_i32, %c0_i32_0 : i32, i32
  }
  func.func @transform_1(%arg0: i32) -> (i32, i32, i32, i32) {
    %c0_i32 = arith.constant 0 : i32
    %c0_i32_0 = arith.constant 0 : i32
    %c0_i32_1 = arith.constant 0 : i32
    %c0_i32_2 = arith.constant 0 : i32
    %c0_i32_3 = arith.constant 0 : i32
    return %c0_i32, %c0_i32_0, %c0_i32_1, %c0_i32_2 : i32, i32, i32, i32
  }
  func.func @transform_2(%arg0: i32) -> (i32, i32) {
    %c0_i32 = arith.constant 0 : i32
    %c0_i32_0 = arith.constant 0 : i32
    %c0_i32_1 = arith.constant 0 : i32
    return %c0_i32, %c0_i32_0 : i32, i32
  }
  func.func @transform_3(%arg0: i32) -> (i32, i32, i32, i32) {
    %c0_i32 = arith.constant 0 : i32
    %c0_i32_0 = arith.constant 0 : i32
    %c0_i32_1 = arith.constant 0 : i32
    %c0_i32_2 = arith.constant 0 : i32
    %c0_i32_3 = arith.constant 0 : i32
    return %c0_i32, %c0_i32_0, %c0_i32_1, %c0_i32_2 : i32, i32, i32, i32
  }
  func.func @transform_4(%arg0: i32) -> (i32, i32) {
    %c0_i32 = arith.constant 0 : i32
    %c0_i32_0 = arith.constant 0 : i32
    %c0_i32_1 = arith.constant 0 : i32
    return %c0_i32, %c0_i32_0 : i32, i32
  }
  func.func @transform_5(%arg0: i32) -> (i32, i32, i32, i32) {
    %c0_i32 = arith.constant 0 : i32
    %c0_i32_0 = arith.constant 0 : i32
    %c0_i32_1 = arith.constant 0 : i32
    %c0_i32_2 = arith.constant 0 : i32
    %c0_i32_3 = arith.constant 0 : i32
    return %c0_i32, %c0_i32_0, %c0_i32_1, %c0_i32_2 : i32, i32, i32, i32
  }
  func.func @transform_6(%arg0: i32) -> (i32, i32) {
    %c0_i32 = arith.constant 0 : i32
    %c0_i32_0 = arith.constant 0 : i32
    %c0_i32_1 = arith.constant 0 : i32
    return %c0_i32, %c0_i32_0 : i32, i32
  }
  func.func @transform_7(%arg0: i32) -> (i32, i32, i32, i32) {
    %c0_i32 = arith.constant 0 : i32
    %c0_i32_0 = arith.constant 0 : i32
    %c0_i32_1 = arith.constant 0 : i32
    %c0_i32_2 = arith.constant 0 : i32
    %c0_i32_3 = arith.constant 0 : i32
    return %c0_i32, %c0_i32_0, %c0_i32_1, %c0_i32_2 : i32, i32, i32, i32
  }
  func.func @transform_8(%arg0: i32) -> (i32, i32) {
    %c0_i32 = arith.constant 0 : i32
    %c0_i32_0 = arith.constant 0 : i32
    %c0_i32_1 = arith.constant 0 : i32
    return %c0_i32, %c0_i32_0 : i32, i32
  }
  func.func @transform_9(%arg0: i32) -> (i32, i32, i32, i32) {
    %c0_i32 = arith.constant 0 : i32
    %c0_i32_0 = arith.constant 0 : i32
    %c0_i32_1 = arith.constant 0 : i32
    %c0_i32_2 = arith.constant 0 : i32
    %c0_i32_3 = arith.constant 0 : i32
    return %c0_i32, %c0_i32_0, %c0_i32_1, %c0_i32_2 : i32, i32, i32, i32
  }
  func.func @transform_10(%arg0: i32) -> (i32, i32) {
    %c0_i32 = arith.constant 0 : i32
    %c0_i32_0 = arith.constant 0 : i32
    %c0_i32_1 = arith.constant 0 : i32
    return %c0_i32, %c0_i32_0 : i32, i32
  }
  func.func @transform_11(%arg0: i32) -> (i32, i32) {
    %c0_i32 = arith.constant 0 : i32
    %c0_i32_0 = arith.constant 0 : i32
    %c0_i32_1 = arith.constant 0 : i32
    return %c0_i32, %c0_i32_0 : i32, i32
  }
}

</mosaic_0001>

<bundles_post_ra>
// kernel: nonlin_regression1_forward.1
= control target key start
LH: loop header
LB: loop body
LE: loop exit
PB: predicated region body
PF: predicated region fallthrough
CT: control target
= control target key end

     0   :  { %16 = vsyncpa [#allocation3], 0  ;;  %s3594_s0 = inlined_call_operand.vmem [shape: bf16[8,896], index: 0, kind: input, shape index: {}]   ;;  %s3595_s1 = inlined_call_operand.hbm [shape: bf16[1,1,896,256], index: 1, kind: input, shape index: {}]   ;;  %s3596_s2 = inlined_call_operand.vmem [shape: f32[1,256], index: 2, kind: input, shape index: {}]   ;;  %s3597_s3 = inlined_call_operand.hbm [shape: bf16[1,1,256,256], index: 3, kind: input, shape index: {}]   ;;  %s3598_s4 = inlined_call_operand.vmem [shape: f32[1,256], index: 4, kind: input, shape index: {}]   ;;  %s3599_s5 = inlined_call_operand.hbm [shape: bf16[1,1,256,256], index: 5, kind: input, shape index: {}]   ;;  %s3600_s6 = inlined_call_operand.vmem [shape: f32[1,256], index: 6, kind: input, shape index: {}]   ;;  %s3601_s7 = inlined_call_operand.hbm [shape: bf16[1,1,256,256], index: 7, kind: input, shape index: {}]   ;;  %s3602_s8 = inlined_call_operand.vmem [shape: f32[1,256], index: 8, kind: input, shape index: {}]   ;;  %s3603_s9 = inlined_call_operand.vmem [shape: bf16[1,1,256,128], index: 9, kind: input, shape index: {}]   ;;  %s3604_s10 = inlined_call_operand.vmem [shape: f32[1,128], index: 10, kind: input, shape index: {}]   ;;  %s3605_s11 = inlined_call_operand.hbm [shape: f32[8,128], index: 11, kind: output, shape index: {}]  }
   0x1   :  { %17 = vsyncpa [#allocation6], 0 }
   0x2   :  { %18 = vsyncpa [#allocation9], 0 }
   0x3   :  { %19 = vsyncpa [#allocation4], 0  ;;  %s41_s19 = sshll.u32 %s3597_s3, 4  ;;  %s3399_s20 = smov [#allocation5]   ;;  %s42_s19 = int_to_ptr.hbm [resolvable:$true] %s41_s19 }
   0x4   :  { %s43_s21 = sshll.u32 %s3399_s20, 4  ;;  %s26_s24 = sshll.u32 %s3595_s1, 4  ;;  %s44_s21 = int_to_ptr.vmem [resolvable:$true] %s43_s21  ;;  %s27_s24 = int_to_ptr.hbm [resolvable:$true] %s26_s24 }
   0x5   :  { %s3400_s25 = smov 128   ;;  %s3401_s26 = smov 8  }
   0x6   :  { %49 = dma.hbm_to_vmem [thread:$0]  %s42_s19, 4096, %s44_s21, [#allocation6], %s3400_s25, %s3400_s25, %s3401_s26  }
   0x7   :  { %s3402_s27 = smov [#allocation2]   ;;  %s56_s12 = sshll.u32 %s3599_s5, 4  ;;  %s57_s12 = int_to_ptr.hbm [resolvable:$true] %s56_s12 }
   0x8   :  { %s28_s28 = sshll.u32 %s3402_s27, 4  ;;  %s71_s14 = sshll.u32 %s3601_s7, 4  ;;  %s29_s28 = int_to_ptr.vmem [resolvable:$true] %s28_s28  ;;  %s72_s14 = int_to_ptr.hbm [resolvable:$true] %s71_s14 }
   0x9   :  { %34 = dma.hbm_to_vmem [thread:$0]  %s27_s24, 14336, %s29_s28, [#allocation3], %s3400_s25, %s3400_s25, %s3401_s26  }
   0xa   :  { %s3403_s15 = smov [#allocation7]   ;;  %s3404_s1 = smov [#allocation8]  }
   0xb   :  { %s58_s16 = sshll.u32 %s3403_s15, 4  ;;  %s73_s17 = sshll.u32 %s3404_s1, 4  ;;  %s59_s16 = int_to_ptr.vmem [resolvable:$true] %s58_s16  ;;  %s74_s17 = int_to_ptr.vmem [resolvable:$true] %s73_s17 }
   0xc   :  { %64 = dma.hbm_to_vmem [thread:$0]  %s57_s12, 4096, %s59_s16, [#allocation6], %s3400_s25, %s3400_s25, %s3401_s26  }
   0xd   :  { %79 = dma.hbm_to_vmem [thread:$0]  %s72_s14, 4096, %s74_s17, [#allocation9], %s3400_s25, %s3400_s25, %s3401_s26  }
   0xe   :  { %3391 = dma.done.wait [#allocation3], 14336  }
   0xf   :  { %3392 = vsyncadd [#allocation3], 4294952960 }
  0x10   :  { %3393 = dma.done.wait [#allocation6], 8192  }
  0x11   :  { %3394 = vsyncadd [#allocation6], 4294959104 }
  0x12   :  { %3395 = dma.done.wait [#allocation9], 4096  }
  0x13   :  { %3396 = vsyncadd [#allocation9], 4294963200  ;;  %v2156_v0 = vld [vmem:[#allocation2 + $0x70] sm:$0xf]  ;;  %v3018_v1 = vld [vmem:[#allocation2 + $0x74] sm:$0xf0] }
  0x14   :  { %v2220_v2 = vld [vmem:[#allocation2 + $0xf0] sm:$0xf]  ;;  %v2157_v3 = vor.u32 %v3018_v1, %v2156_v0  ;;  %v3034_v4 = vld [vmem:[#allocation2 + $0xf4] sm:$0xf0]  ;;  %v2148_v9 = vld [vmem:[#allocation2 + $0x60] sm:$0xf] }
  0x15   :  { %v2284_v5 = vld [vmem:[#allocation2 + $0x170] sm:$0xf]  ;;  %v3050_v6 = vld [vmem:[#allocation2 + $0x174] sm:$0xf0]  ;;  %v2221_v7 = vor.u32 %v3034_v4, %v2220_v2  ;;  %v3016_v10 = vld [vmem:[#allocation2 + $0x64] sm:$0xf0] }
  0x16   :  { %v2285_v8 = vor.u32 %v3050_v6, %v2284_v5  ;;  %v2212_v11 = vld [vmem:[#allocation2 + $0xe0] sm:$0xf]  ;;  %809 = vmatpush.bf16.msra.mxu0 %v2157_v3  ;;  %v2149_v12 = vor.u32 %v3016_v10, %v2148_v9  ;;  %v3032_v13 = vld [vmem:[#allocation2 + $0xe4] sm:$0xf0]  ;;  %v2140_v18 = vld [vmem:[#allocation2 + $0x50] sm:$0xf] }
  0x17   :  { %v2276_v14 = vld [vmem:[#allocation2 + $0x160] sm:$0xf]  ;;  %v3048_v15 = vld [vmem:[#allocation2 + $0x164] sm:$0xf0]  ;;  %822 = vmatpush.bf16.msra.mxu1 %v2221_v7  ;;  %v2213_v16 = vor.u32 %v3032_v13, %v2212_v11  ;;  %v3014_v19 = vld [vmem:[#allocation2 + $0x54] sm:$0xf0] }
  0x18   :  { %835 = vmatpush.bf16.msra.mxu2 %v2285_v8  ;;  %v2277_v17 = vor.u32 %v3048_v15, %v2276_v14  ;;  %v2204_v20 = vld [vmem:[#allocation2 + $0xd0] sm:$0xf]  ;;  %v3030_v21 = vld [vmem:[#allocation2 + $0xd4] sm:$0xf0]  ;;  %v2141_v24 = vor.u32 %v3014_v19, %v2140_v18  ;;  %v2132_v25 = vld [vmem:[#allocation2 + $0x40] sm:$0xf] }
  0x19   :  { %v2268_v22 = vld [vmem:[#allocation2 + $0x150] sm:$0xf]  ;;  %v3046_v23 = vld [vmem:[#allocation2 + $0x154] sm:$0xf0]  ;;  %v3012_v26 = vld [vmem:[#allocation2 + $0x44] sm:$0xf0]  ;;  %v2205_v27 = vor.u32 %v3030_v21, %v2204_v20 }
  0x1a   :  { %810 = vmatpush.bf16.msra.mxu0 %v2149_v12  ;;  %v2269_v28 = vor.u32 %v3046_v23, %v2268_v22  ;;  %v2196_v29 = vld [vmem:[#allocation2 + $0xc0] sm:$0xf]  ;;  %v2348_v30 = vld [vmem:[#allocation2 + $0x1f0] sm:$0xf]  ;;  %v3066_v31 = vld [vmem:[#allocation2 + $0x1f4] sm:$0xf0]  ;;  %v2133_v37 = vor.u32 %v3012_v26, %v2132_v25 }
  0x1b   :  { %823 = vmatpush.bf16.msra.mxu1 %v2213_v16  ;;  %v3028_v32 = vld [vmem:[#allocation2 + $0xc4] sm:$0xf0]  ;;  %v2260_v33 = vld [vmem:[#allocation2 + $0x140] sm:$0xf]  ;;  %v2349_v35 = vor.u32 %v3066_v31, %v2348_v30  ;;  %v2124_v38 = vld [vmem:[#allocation2 + $0x30] sm:$0xf] }
  0x1c   :  { %836 = vmatpush.bf16.msra.mxu2 %v2277_v17  ;;  %v3044_v34 = vld [vmem:[#allocation2 + $0x144] sm:$0xf0]  ;;  %v2340_v36 = vld [vmem:[#allocation2 + $0x1e0] sm:$0xf]  ;;  %v3010_v39 = vld [vmem:[#allocation2 + $0x34] sm:$0xf0]  ;;  %v2197_v41 = vor.u32 %v3028_v32, %v2196_v29 }
  0x1d   :  { %848 = vmatpush.bf16.msra.mxu3 %v2349_v35  ;;  %v3064_v40 = vld [vmem:[#allocation2 + $0x1e4] sm:$0xf0]  ;;  %v2261_v42 = vor.u32 %v3044_v34, %v2260_v33  ;;  %v2188_v43 = vld [vmem:[#allocation2 + $0xb0] sm:$0xf]  ;;  %v3026_v44 = vld [vmem:[#allocation2 + $0xb4] sm:$0xf0]  ;;  %v2125_v50 = vor.u32 %v3010_v39, %v2124_v38 }
  0x1e   :  { %811 = vmatpush.bf16.msra.mxu0 %v2141_v24  ;;  %v2252_v45 = vld [vmem:[#allocation2 + $0x130] sm:$0xf]  ;;  %v2341_v46 = vor.u32 %v3064_v40, %v2340_v36  ;;  %v3042_v47 = vld [vmem:[#allocation2 + $0x134] sm:$0xf0]  ;;  %v2116_v51 = vld [vmem:[#allocation2 + $0x20] sm:$0xf]  ;;  %v2189_v54 = vor.u32 %v3026_v44, %v2188_v43 }
  0x1f   :  { %824 = vmatpush.bf16.msra.mxu1 %v2205_v27  ;;  %v2332_v48 = vld [vmem:[#allocation2 + $0x1d0] sm:$0xf]  ;;  %v3062_v49 = vld [vmem:[#allocation2 + $0x1d4] sm:$0xf0]  ;;  %v3008_v52 = vld [vmem:[#allocation2 + $0x24] sm:$0xf0]  ;;  %v2253_v55 = vor.u32 %v3042_v47, %v2252_v45 }
  0x20   :  { %837 = vmatpush.bf16.msra.mxu2 %v2269_v28  ;;  %v2333_v53 = vor.u32 %v3062_v49, %v2332_v48  ;;  %v2180_v56 = vld [vmem:[#allocation2 + $0xa0] sm:$0xf]  ;;  %v3060_v58 = vld [vmem:[#allocation2 + $0x1c4] sm:$0xf0]  ;;  %v2117_v62 = vor.u32 %v3008_v52, %v2116_v51  ;;  %v2108_v63 = vld [vmem:[#allocation2 + $0x10] sm:$0xf] }
  0x21   :  { %849 = vmatpush.bf16.msra.mxu3 %v2341_v46  ;;  %v2324_v57 = vld [vmem:[#allocation2 + $0x1c0] sm:$0xf]  ;;  %v3024_v59 = vld [vmem:[#allocation2 + $0xa4] sm:$0xf0]  ;;  %v3006_v0 = vld [vmem:[#allocation2 + $0x14] sm:$0xf0] }
  0x22   :  { %812 = vmatpush.bf16.msra.mxu0 %v2133_v37  ;;  %v2244_v60 = vld [vmem:[#allocation2 + $0x120] sm:$0xf]  ;;  %v3040_v61 = vld [vmem:[#allocation2 + $0x124] sm:$0xf0]  ;;  %v2325_v1 = vor.u32 %v3060_v58, %v2324_v57  ;;  %v2181_v2 = vor.u32 %v3024_v59, %v2180_v56  ;;  %v2172_v4 = vld [vmem:[#allocation2 + $0x90] sm:$0xf]  ;;  %v2109_v10 = vor.u32 %v3006_v0, %v2108_v63 }
  0x23   :  { %825 = vmatpush.bf16.msra.mxu1 %v2197_v41  ;;  %v2245_v3 = vor.u32 %v3040_v61, %v2244_v60  ;;  %v2316_v5 = vld [vmem:[#allocation2 + $0x1b0] sm:$0xf]  ;;  %v3058_v6 = vld [vmem:[#allocation2 + $0x1b4] sm:$0xf0]  ;;  %v2100_v11 = vld [vmem:[#allocation2] sm:$0xf] }
  0x24   :  { %838 = vmatpush.bf16.msra.mxu2 %v2261_v42  ;;  %v3022_v7 = vld [vmem:[#allocation2 + $0x94] sm:$0xf0]  ;;  %v2236_v8 = vld [vmem:[#allocation2 + $0x110] sm:$0xf]  ;;  %v3004_v12 = vld [vmem:[#allocation2 + $0x4] sm:$0xf0]  ;;  %v2317_v14 = vor.u32 %v3058_v6, %v2316_v5 }
  0x25   :  { %850 = vmatpush.bf16.msra.mxu3 %v2333_v53  ;;  %v3038_v9 = vld [vmem:[#allocation2 + $0x114] sm:$0xf0]  ;;  %v2164_v13 = vld [vmem:[#allocation2 + $0x80] sm:$0xf]  ;;  %v2173_v15 = vor.u32 %v3022_v7, %v2172_v4  ;;  %v3020_v17 = vld [vmem:[#allocation2 + $0x84] sm:$0xf0]  ;;  %v2101_v26 = vor.u32 %v3004_v12, %v2100_v11 }
  0x26   :  { %813 = vmatpush.bf16.msra.mxu0 %v2125_v50  ;;  %v2237_v16 = vor.u32 %v3038_v9, %v2236_v8  ;;  %v2308_v18 = vld [vmem:[#allocation2 + $0x1a0] sm:$0xf]  ;;  %v3056_v19 = vld [vmem:[#allocation2 + $0x1a4] sm:$0xf0]  ;;  %v2412_v22 = vld [vmem:[#allocation2 + $0x270] sm:$0xf]  ;;  %v2165_v30 = vor.u32 %v3020_v17, %v2164_v13 }
  0x27   :  { %826 = vmatpush.bf16.msra.mxu1 %v2189_v54  ;;  %v2228_v20 = vld [vmem:[#allocation2 + $0x100] sm:$0xf]  ;;  %v3036_v21 = vld [vmem:[#allocation2 + $0x104] sm:$0xf0]  ;;  %v3082_v23 = vld [vmem:[#allocation2 + $0x274] sm:$0xf0]  ;;  %v2309_v29 = vor.u32 %v3056_v19, %v2308_v18 }
  0x28   :  { %839 = vmatpush.bf16.msra.mxu2 %v2253_v55  ;;  %v2476_v24 = vld [vmem:[#allocation2 + $0x2f0] sm:$0xf]  ;;  %v3098_v25 = vld [vmem:[#allocation2 + $0x2f4] sm:$0xf0]  ;;  %v2229_v31 = vor.u32 %v3036_v21, %v2228_v20  ;;  %v2413_v34 = vor.u32 %v3082_v23, %v2412_v22  ;;  %v2404_v36 = vld [vmem:[#allocation2 + $0x260] sm:$0xf] }
  0x29   :  { %851 = vmatpush.bf16.msra.mxu3 %v2325_v1  ;;  %v2540_v27 = vld [vmem:[#allocation2 + $0x370] sm:$0xf]  ;;  %v3114_v28 = vld [vmem:[#allocation2 + $0x374] sm:$0xf0]  ;;  %v2477_v35 = vor.u32 %v3098_v25, %v2476_v24  ;;  %v3080_v37 = vld [vmem:[#allocation2 + $0x264] sm:$0xf0] }
  0x2a   :  { %814 = vmatpush.bf16.msra.mxu0 %v2117_v62  ;;  %v2300_v32 = vld [vmem:[#allocation2 + $0x190] sm:$0xf]  ;;  %v3054_v33 = vld [vmem:[#allocation2 + $0x194] sm:$0xf0]  ;;  %v2541_v38 = vor.u32 %v3114_v28, %v2540_v27  ;;  %v2468_v39 = vld [vmem:[#allocation2 + $0x2e0] sm:$0xf]  ;;  %v2405_v46 = vor.u32 %v3080_v37, %v2404_v36 }
  0x2b   :  { %827 = vmatpush.bf16.msra.mxu1 %v2181_v2  ;;  %v3096_v40 = vld [vmem:[#allocation2 + $0x2e4] sm:$0xf0]  ;;  %v2532_v42 = vld [vmem:[#allocation2 + $0x360] sm:$0xf]  ;;  %v2301_v44 = vor.u32 %v3054_v33, %v2300_v32  ;;  %v2396_v51 = vld [vmem:[#allocation2 + $0x250] sm:$0xf] }
  0x2c   :  { %840 = vmatpush.bf16.msra.mxu2 %v2245_v3  ;;  %v103_v41 = vld [vmem:[%s3594_s0 + $0x8] sm:$0xff]  ;;  %v2292_v47 = vld [vmem:[#allocation2 + $0x180] sm:$0xf]  ;;  %v2469_v50 = vor.u32 %v3096_v40, %v2468_v39  ;;  %v3017_v52 = vld [vmem:[#allocation2 + $0x74] sm:$0xf]  ;;  %s3405_s13 = smov [#allocation10]  }
  0x2d   :  { %852 = vmatpush.bf16.msra.mxu3 %v2317_v14  ;;  %v3112_v43 = vld [vmem:[#allocation2 + $0x364] sm:$0xf0]  ;;  %v230_v45 = vunpack.c.l.b16 %v103_v41  ;;  %v102_v49 = vld [vmem:[%s3594_s0] sm:$0xff]  ;;  %v2158_v53 = vld [vmem:[#allocation2 + $0x78] sm:$0xf0]  ;;  %v231_v61 = vunpack.c.h.b16 %v103_v41  ;;  %s2084_s14 = sshll.u32 %s3405_s13, 4  ;;  %s2085_s14 = int_to_ptr.vmem [resolvable:$true] %s2084_s14 }
  0x2e   :  { %815 = vmatpush.bf16.msra.mxu0 %v2109_v10  ;;  %v3052_v48 = vld [vmem:[#allocation2 + $0x184] sm:$0xf0]  ;;  %v228_v55 = vunpack.c.l.b16 %v102_v49  ;;  %v229_v56 = vunpack.c.h.b16 %v102_v49  ;;  %v2533_v57 = vor.u32 %v3112_v43, %v2532_v42  ;;  %v3078_v58 = vld [vmem:[#allocation2 + $0x254] sm:$0xf0]  ;;  %v2460_v59 = vld [vmem:[#allocation2 + $0x2d0] sm:$0xf]  ;;  %v2161_v3 = vor.u32 %v3017_v52, %v2158_v53 }
  0x2f   :  { %828 = vmatpush.bf16.msra.mxu1 %v2173_v15  ;;  %v3484_v54 = vpack.c.b16 %v230_v45, %v230_v45  ;;  %v3094_v60 = vld [vmem:[#allocation2 + $0x2d4] sm:$0xf0]  ;;  %v2524_v62 = vld [vmem:[#allocation2 + $0x350] sm:$0xf]  ;;  %v2293_v0 = vor.u32 %v3052_v48, %v2292_v47  ;;  %v2397_v4 = vor.u32 %v3078_v58, %v2396_v51  ;;  %v2388_v6 = vld [vmem:[#allocation2 + $0x240] sm:$0xf]  ;;  %v3492_v13 = vpack.c.b16 %v231_v61, %v231_v61 }
  0x30   :  { %841 = vmatpush.bf16.msra.mxu2 %v2237_v16  ;;  %v3110_v63 = vld [vmem:[#allocation2 + $0x354] sm:$0xf0]  ;;  %v3487_v1 = vpack.c.b16 %v228_v55, %v228_v55  ;;  %v3489_v2 = vpack.c.b16 %v229_v56, %v229_v56  ;;  %v2461_v5 = vor.u32 %v3094_v60, %v2460_v59  ;;  %v3015_v7 = vld [vmem:[#allocation2 + $0x64] sm:$0xf]  ;;  %v2150_v8 = vld [vmem:[#allocation2 + $0x68] sm:$0xf0] }
  0x31   :  { %853 = vmatpush.bf16.msra.mxu3 %v2309_v29  ;;  %v2525_v9 = vor.u32 %v3110_v63, %v2524_v62  ;;  %v3076_v10 = vld [vmem:[#allocation2 + $0x244] sm:$0xf0]  ;;  %v2452_v11 = vld [vmem:[#allocation2 + $0x2c0] sm:$0xf]  ;;  %v2153_v16 = vor.u32 %v3015_v7, %v2150_v8  ;;  %v2380_v19 = vld [vmem:[#allocation2 + $0x230] sm:$0xf] }
  0x32   :  { %816 = vmatpush.bf16.msra.mxu0 %v2101_v26  ;;  %v3092_v12 = vld [vmem:[#allocation2 + $0x2c4] sm:$0xf0]  ;;  %v2516_v14 = vld [vmem:[#allocation2 + $0x340] sm:$0xf]  ;;  %v2389_v17 = vor.u32 %v3076_v10, %v2388_v6  ;;  %v3013_v20 = vld [vmem:[#allocation2 + $0x54] sm:$0xf] }
  0x33   :  { %829 = vmatpush.bf16.msra.mxu1 %v2165_v30  ;;  %v3108_v15 = vld [vmem:[#allocation2 + $0x344] sm:$0xf0]  ;;  %v2453_v18 = vor.u32 %v3092_v12, %v2452_v11  ;;  %v2142_v21 = vld [vmem:[#allocation2 + $0x58] sm:$0xf0]  ;;  %v3074_v23 = vld [vmem:[#allocation2 + $0x234] sm:$0xf0] }
  0x34   :  { %842 = vmatpush.bf16.msra.mxu2 %v2229_v31  ;;  %v2517_v22 = vor.u32 %v3108_v15, %v2516_v14  ;;  %v2444_v24 = vld [vmem:[#allocation2 + $0x2b0] sm:$0xf]  ;;  %v3090_v25 = vld [vmem:[#allocation2 + $0x2b4] sm:$0xf0]  ;;  %v2145_v28 = vor.u32 %v3013_v20, %v2142_v21  ;;  %v2381_v29 = vor.u32 %v3074_v23, %v2380_v19  ;;  %v2372_v31 = vld [vmem:[#allocation2 + $0x220] sm:$0xf] }
  0x35   :  { %854 = vmatpush.bf16.msra.mxu3 %v2301_v44  ;;  %817 = vmatmul.bf16.vlgmr.msra.gmra.mxu0 %v3487_v1  ;;  %v2508_v26 = vld [vmem:[#allocation2 + $0x330] sm:$0xf]  ;;  %v3106_v27 = vld [vmem:[#allocation2 + $0x334] sm:$0xf0]  ;;  %v2445_v30 = vor.u32 %v3090_v25, %v2444_v24  ;;  %v3011_v32 = vld [vmem:[#allocation2 + $0x44] sm:$0xf] }
  0x36   :  { %861 = vmatpush.bf16.msrb.mxu0 %v2413_v34  ;;  %830 = vmatmul.bf16.vlgmr.msra.gmra.mxu1 %v3489_v2  ;;  %v2134_v33 = vld [vmem:[#allocation2 + $0x48] sm:$0xf0]  ;;  %v2509_v34 = vor.u32 %v3106_v27, %v2508_v26  ;;  %v2436_v36 = vld [vmem:[#allocation2 + $0x2a0] sm:$0xf]  ;;  %v3088_v37 = vld [vmem:[#allocation2 + $0x2a4] sm:$0xf0] }
  0x37   :  { %874 = vmatpush.bf16.msrb.mxu1 %v2477_v35  ;;  %843 = vmatmul.bf16.vlgmr.msra.gmra.mxu2 %v3484_v54  ;;  %v3072_v35 = vld [vmem:[#allocation2 + $0x224] sm:$0xf0]  ;;  %v2137_v40 = vor.u32 %v3011_v32, %v2134_v33  ;;  %v2437_v42 = vor.u32 %v3088_v37, %v2436_v36  ;;  %v2364_v43 = vld [vmem:[#allocation2 + $0x210] sm:$0xf]  ;;  %v3009_v44 = vld [vmem:[#allocation2 + $0x34] sm:$0xf] }
  0x38   :  { %887 = vmatpush.bf16.msrb.mxu2 %v2541_v38  ;;  %v2500_v38 = vld [vmem:[#allocation2 + $0x320] sm:$0xf]  ;;  %v3104_v39 = vld [vmem:[#allocation2 + $0x324] sm:$0xf0]  ;;  %v2373_v41 = vor.u32 %v3072_v35, %v2372_v31  ;;  %v2126_v45 = vld [vmem:[#allocation2 + $0x38] sm:$0xf0] }
  0x39   :  { %855 = vmatpush.bf16.msra.mxu3 %v2293_v0  ;;  %v3070_v47 = vld [vmem:[#allocation2 + $0x214] sm:$0xf0]  ;;  %v2428_v48 = vld [vmem:[#allocation2 + $0x290] sm:$0xf]  ;;  %v2356_v52 = vld [vmem:[#allocation2 + $0x200] sm:$0xf] }
  0x3a   :  { %862 = vmatpush.bf16.msrb.mxu0 %v2405_v46  ;;  %v2501_v46 = vor.u32 %v3104_v39, %v2500_v38  ;;  %v3086_v49 = vld [vmem:[#allocation2 + $0x294] sm:$0xf0]  ;;  %v3068_v53 = vld [vmem:[#allocation2 + $0x204] sm:$0xf0]  ;;  %v2420_v55 = vld [vmem:[#allocation2 + $0x280] sm:$0xf]  ;;  %v2365_v58 = vor.u32 %v3070_v47, %v2364_v43 }
  0x3b   :  { %875 = vmatpush.bf16.msrb.mxu1 %v2469_v50  ;;  %v2492_v50 = vld [vmem:[#allocation2 + $0x310] sm:$0xf]  ;;  %v3102_v51 = vld [vmem:[#allocation2 + $0x314] sm:$0xf0]  ;;  %v3084_v56 = vld [vmem:[#allocation2 + $0x284] sm:$0xf0]  ;;  %v2429_v59 = vor.u32 %v3086_v49, %v2428_v48  ;;  %v2357_v15 = vor.u32 %v3068_v53, %v2356_v52 }
  0x3c   :  { %888 = vmatpush.bf16.msrb.mxu2 %v2533_v57  ;;  %856 = vmatmul.bf16.vlgmr.msra.gmra.mxu3 %v3492_v13  ;;  %v2129_v57 = vor.u32 %v3009_v44, %v2126_v45  ;;  %v104_v60 = vld [vmem:[%s3594_s0 + $0x10] sm:$0xff]  ;;  %v3007_v61 = vld [vmem:[#allocation2 + $0x24] sm:$0xf]  ;;  %v2118_v62 = vld [vmem:[#allocation2 + $0x28] sm:$0xf0]  ;;  %v2493_v63 = vor.u32 %v3102_v51, %v2492_v50  ;;  %s2086_s16 = sshll.u32 %s3605_s11, 4  ;;  %s2087_s16 = int_to_ptr.hbm [resolvable:$true] %s2086_s16 }
  0x3d   :  { %900 = vmatpush.bf16.msrb.mxu3 %v2161_v3  ;;  %v2484_v0 = vld [vmem:[#allocation2 + $0x300] sm:$0xf]  ;;  %v3100_v3 = vld [vmem:[#allocation2 + $0x304] sm:$0xf0]  ;;  %v2222_v6 = vld [vmem:[#allocation2 + $0xf8] sm:$0xf0]  ;;  %v2121_v10 = vor.u32 %v3007_v61, %v2118_v62  ;;  %v233_v11 = vunpack.c.h.b16 %v104_v60 }
  0x3e   :  { %863 = vmatpush.bf16.msrb.mxu0 %v2397_v4  ;;  %v105_v4 = vld [vmem:[%s3594_s0 + $0x18] sm:$0xf]  ;;  %v3049_v7 = vld [vmem:[#allocation2 + $0x174] sm:$0xf]  ;;  %v2286_v8 = vld [vmem:[#allocation2 + $0x178] sm:$0xf0] }
  0x3f   :  { %876 = vmatpush.bf16.msrb.mxu1 %v2461_v5  ;;  %v3033_v5 = vld [vmem:[#allocation2 + $0xf4] sm:$0xf]  ;;  %v2350_v14 = vld [vmem:[#allocation2 + $0x1f8] sm:$0xf0]  ;;  %v3031_v23 = vld [vmem:[#allocation2 + $0xe4] sm:$0xf] }
  0x40   :  { %889 = vmatpush.bf16.msrb.mxu2 %v2525_v9  ;;  %v232_v9 = vunpack.c.l.b16 %v104_v60  ;;  %v3065_v12 = vld [vmem:[#allocation2 + $0x1f4] sm:$0xf]  ;;  %v2225_v19 = vor.u32 %v3033_v5, %v2222_v6  ;;  %v2110_v21 = vld [vmem:[#allocation2 + $0x18] sm:$0xf0]  ;;  %v2214_v24 = vld [vmem:[#allocation2 + $0xe8] sm:$0xf0] }
  0x41   :  { %901 = vmatpush.bf16.msrb.mxu3 %v2153_v16  ;;  %v2421_v16 = vor.u32 %v3084_v56, %v2420_v55  ;;  %v3005_v20 = vld [vmem:[#allocation2 + $0x14] sm:$0xf]  ;;  %v3047_v25 = vld [vmem:[#allocation2 + $0x164] sm:$0xf]  ;;  %v2353_v26 = vor.u32 %v3065_v12, %v2350_v14  ;;  %v2342_v31 = vld [vmem:[#allocation2 + $0x1e8] sm:$0xf0]  ;;  %v2217_v35 = vor.u32 %v3031_v23, %v2214_v24 }
  0x42   :  { %864 = vmatpush.bf16.msrb.mxu0 %v2389_v17  ;;  %v234_v17 = vunpack.c.l.b16 %v105_v4  ;;  %v3502_v27 = vpack.c.b16 %v232_v9, %v232_v9  ;;  %v2113_v33 = vor.u32 %v3005_v20, %v2110_v21  ;;  %v2206_v36 = vld [vmem:[#allocation2 + $0xd8] sm:$0xf0]  ;;  %v3003_v37 = vld [vmem:[#allocation2 + $0x4] sm:$0xf]  ;;  %v2102_v38 = vld [vmem:[#allocation2 + $0x8] sm:$0xf0] }
  0x43   :  { %877 = vmatpush.bf16.msrb.mxu1 %v2453_v18  ;;  %v2485_v18 = vor.u32 %v3100_v3, %v2484_v0  ;;  %v2270_v44 = vld [vmem:[#allocation2 + $0x158] sm:$0xf0]  ;;  %v3061_v45 = vld [vmem:[#allocation2 + $0x1d4] sm:$0xf]  ;;  %v2105_v47 = vor.u32 %v3003_v37, %v2102_v38  ;;  %v3027_v49 = vld [vmem:[#allocation2 + $0xc4] sm:$0xf] }
  0x44   :  { %890 = vmatpush.bf16.msrb.mxu2 %v2517_v22  ;;  %v2289_v22 = vor.u32 %v3049_v7, %v2286_v8  ;;  %v3506_v32 = vpack.c.b16 %v234_v17, %v234_v17  ;;  %v2198_v50 = vld [vmem:[#allocation2 + $0xc8] sm:$0xf0]  ;;  %v3043_v53 = vld [vmem:[#allocation2 + $0x144] sm:$0xf]  ;;  %v3025_v62 = vld [vmem:[#allocation2 + $0xb4] sm:$0xf] }
  0x45   :  { %902 = vmatpush.bf16.msrb.mxu3 %v2145_v28  ;;  %v2278_v28 = vld [vmem:[#allocation2 + $0x168] sm:$0xf0]  ;;  %v3079_v55 = vld [vmem:[#allocation2 + $0x264] sm:$0xf]  ;;  %v2201_v61 = vor.u32 %v3027_v49, %v2198_v50  ;;  %v3041_v4 = vld [vmem:[#allocation2 + $0x134] sm:$0xf] }
  0x46   :  { %865 = vmatpush.bf16.msrb.mxu0 %v2381_v29  ;;  %v3504_v29 = vpack.c.b16 %v233_v11, %v233_v11  ;;  %v2281_v39 = vor.u32 %v3047_v25, %v2278_v28  ;;  %v2406_v56 = vld [vmem:[#allocation2 + $0x268] sm:$0xf0]  ;;  %v3077_v5 = vld [vmem:[#allocation2 + $0x254] sm:$0xf]  ;;  %v2398_v6 = vld [vmem:[#allocation2 + $0x258] sm:$0xf0] }
  0x47   :  { %878 = vmatpush.bf16.msrb.mxu1 %v2445_v30  ;;  %v3063_v30 = vld [vmem:[#allocation2 + $0x1e4] sm:$0xf]  ;;  %v2326_v60 = vld [vmem:[#allocation2 + $0x1c8] sm:$0xf0]  ;;  %v2409_v0 = vor.u32 %v3079_v55, %v2406_v56  ;;  %v2254_v8 = vld [vmem:[#allocation2 + $0x138] sm:$0xf0] }
  0x48   :  { %891 = vmatpush.bf16.msrb.mxu2 %v2509_v34  ;;  %v3029_v34 = vld [vmem:[#allocation2 + $0xd4] sm:$0xf]  ;;  %v2345_v43 = vor.u32 %v3063_v30, %v2342_v31  ;;  %v3023_v12 = vld [vmem:[#allocation2 + $0xa4] sm:$0xf]  ;;  %v2182_v14 = vld [vmem:[#allocation2 + $0xa8] sm:$0xf0] }
  0x49   :  { %903 = vmatpush.bf16.msrb.mxu3 %v2137_v40  ;;  %v3045_v40 = vld [vmem:[#allocation2 + $0x154] sm:$0xf]  ;;  %v2209_v48 = vor.u32 %v3029_v34, %v2206_v36  ;;  %v3039_v17 = vld [vmem:[#allocation2 + $0x124] sm:$0xf]  ;;  %v2246_v21 = vld [vmem:[#allocation2 + $0x128] sm:$0xf0]  ;;  %v2185_v24 = vor.u32 %v3023_v12, %v2182_v14 }
  0x4a   :  { %866 = vmatpush.bf16.msrb.mxu0 %v2373_v41  ;;  %v3081_v41 = vld [vmem:[#allocation2 + $0x274] sm:$0xf]  ;;  %v2273_v52 = vor.u32 %v3045_v40, %v2270_v44  ;;  %v2310_v23 = vld [vmem:[#allocation2 + $0x1a8] sm:$0xf0]  ;;  %v2174_v25 = vld [vmem:[#allocation2 + $0x98] sm:$0xf0]  ;;  %v2249_v28 = vor.u32 %v3039_v17, %v2246_v21 }
  0x4b   :  { %879 = vmatpush.bf16.msrb.mxu1 %v2437_v42  ;;  %v2414_v42 = vld [vmem:[#allocation2 + $0x278] sm:$0xf0]  ;;  %v3057_v9 = vld [vmem:[#allocation2 + $0x1b4] sm:$0xf]  ;;  %v2166_v40 = vld [vmem:[#allocation2 + $0x88] sm:$0xf0] }
  0x4c   :  { %892 = vmatpush.bf16.msrb.mxu2 %v2501_v46  ;;  %v2334_v46 = vld [vmem:[#allocation2 + $0x1d8] sm:$0xf0]  ;;  %v2417_v51 = vor.u32 %v3081_v41, %v2414_v42  ;;  %v3037_v30 = vld [vmem:[#allocation2 + $0x114] sm:$0xf]  ;;  %v3035_v41 = vld [vmem:[#allocation2 + $0x104] sm:$0xf] }
  0x4d   :  { %904 = vmatpush.bf16.msrb.mxu3 %v2129_v57  ;;  %v2337_v57 = vor.u32 %v3061_v45, %v2334_v46  ;;  %v3073_v31 = vld [vmem:[#allocation2 + $0x234] sm:$0xf]  ;;  %v2302_v37 = vld [vmem:[#allocation2 + $0x198] sm:$0xf0]  ;;  %v2230_v44 = vld [vmem:[#allocation2 + $0x108] sm:$0xf0] }
  0x4e   :  { %867 = vmatpush.bf16.msrb.mxu0 %v2365_v58  ;;  %v2262_v58 = vld [vmem:[#allocation2 + $0x148] sm:$0xf0]  ;;  %v3053_v36 = vld [vmem:[#allocation2 + $0x194] sm:$0xf]  ;;  %v3071_v45 = vld [vmem:[#allocation2 + $0x224] sm:$0xf] }
  0x4f   :  { %880 = vmatpush.bf16.msrb.mxu1 %v2429_v59  ;;  %v3059_v59 = vld [vmem:[#allocation2 + $0x1c4] sm:$0xf]  ;;  %v2265_v3 = vor.u32 %v3043_v53, %v2262_v58  ;;  %v2374_v46 = vld [vmem:[#allocation2 + $0x228] sm:$0xf0]  ;;  %v2478_v49 = vld [vmem:[#allocation2 + $0x2f8] sm:$0xf0] }
  0x50   :  { %893 = vmatpush.bf16.msrb.mxu2 %v2493_v63  ;;  %v2190_v63 = vld [vmem:[#allocation2 + $0xb8] sm:$0xf0]  ;;  %v2329_v7 = vor.u32 %v3059_v59, %v2326_v60  ;;  %v3113_v50 = vld [vmem:[#allocation2 + $0x374] sm:$0xf]  ;;  %v2294_v53 = vld [vmem:[#allocation2 + $0x188] sm:$0xf0]  ;;  %v2377_v56 = vor.u32 %v3071_v45, %v2374_v46 }
  0x51   :  { %905 = vmatpush.bf16.msrb.mxu3 %v2121_v10  ;;  %v2318_v10 = vld [vmem:[#allocation2 + $0x1b8] sm:$0xf0]  ;;  %v2193_v11 = vor.u32 %v3025_v62, %v2190_v63  ;;  %v3069_v59 = vld [vmem:[#allocation2 + $0x214] sm:$0xf]  ;;  %v3095_v62 = vld [vmem:[#allocation2 + $0x2e4] sm:$0xf] }
  0x52   :  { %868 = vmatpush.bf16.msrb.mxu0 %v2357_v15  ;;  %v2401_v15 = vor.u32 %v3077_v5, %v2398_v6  ;;  %v2321_v20 = vor.u32 %v3057_v9, %v2318_v10  ;;  %v2366_v60 = vld [vmem:[#allocation2 + $0x218] sm:$0xf0]  ;;  %v2470_v63 = vld [vmem:[#allocation2 + $0x2e8] sm:$0xf0]  ;;  %v3093_v10 = vld [vmem:[#allocation2 + $0x2d4] sm:$0xf] }
  0x53   :  { %881 = vmatpush.bf16.msrb.mxu1 %v2421_v16  ;;  %v2257_v16 = vor.u32 %v3041_v4, %v2254_v8  ;;  %v2534_v4 = vld [vmem:[#allocation2 + $0x368] sm:$0xf0]  ;;  %v2369_v5 = vor.u32 %v3069_v59, %v2366_v60  ;;  %v2473_v6 = vor.u32 %v3095_v62, %v2470_v63  ;;  %v3109_v12 = vld [vmem:[#allocation2 + $0x354] sm:$0xf]  ;;  %v2526_v14 = vld [vmem:[#allocation2 + $0x358] sm:$0xf0] }
  0x54   :  { %894 = vmatpush.bf16.msrb.mxu2 %v2485_v18  ;;  %v3075_v18 = vld [vmem:[#allocation2 + $0x244] sm:$0xf]  ;;  %v2358_v8 = vld [vmem:[#allocation2 + $0x208] sm:$0xf0]  ;;  %v2529_v17 = vor.u32 %v3109_v12, %v2526_v14  ;;  %v2590_v63 = vld [vmem:[#allocation5 + $0x50] sm:$0xf] }
  0x55   :  { %869 = vmatmul.bf16.vlgmr.msrb.gmra.mxu0 %v3502_v27  ;;  %906 = vmatpush.bf16.msrb.mxu3 %v2113_v33  ;;  %v2382_v33 = vld [vmem:[#allocation2 + $0x238] sm:$0xf0]  ;;  %v2518_v21 = vld [vmem:[#allocation2 + $0x348] sm:$0xf0]  ;;  %v3124_v12 = vld [vmem:[#allocation5 + $0x44] sm:$0xf0] }
  0x56   :  { %913 = vmatpush.bf16.msra.mxu0 %v2225_v19  ;;  %882 = vmatmul.bf16.vlgmr.msrb.gmra.mxu1 %v3504_v29  ;;  %v2390_v19 = vld [vmem:[#allocation2 + $0x248] sm:$0xf0]  ;;  %v2385_v42 = vor.u32 %v3073_v31, %v2382_v33  ;;  %v3123_v14 = vld [vmem:[#allocation5 + $0x44] sm:$0xf] }
  0x57   :  { %926 = vmatpush.bf16.msra.mxu1 %v2289_v22  ;;  %895 = vmatmul.bf16.vlgmr.msrb.gmra.mxu2 %v3506_v32  ;;  %v3055_v22 = vld [vmem:[#allocation2 + $0x1a4] sm:$0xf]  ;;  %v2502_v31 = vld [vmem:[#allocation2 + $0x328] sm:$0xf0] }
  0x58   :  { %939 = vmatpush.bf16.msra.mxu2 %v2353_v26  ;;  %v2393_v26 = vor.u32 %v3075_v18, %v2390_v19  ;;  %v2313_v34 = vor.u32 %v3055_v22, %v2310_v23  ;;  %v3091_v18 = vld [vmem:[#allocation2 + $0x2c4] sm:$0xf]  ;;  %v2454_v19 = vld [vmem:[#allocation2 + $0x2c8] sm:$0xf0]  ;;  %v3089_v23 = vld [vmem:[#allocation2 + $0x2b4] sm:$0xf] }
  0x59   :  { %907 = vmatpush.bf16.msrb.mxu3 %v2105_v47  ;;  %v2305_v47 = vor.u32 %v3053_v36, %v2302_v37  ;;  %v2457_v22 = vor.u32 %v3091_v18, %v2454_v19  ;;  %v2430_v36 = vld [vmem:[#allocation2 + $0x298] sm:$0xf0]  ;;  %v3101_v37 = vld [vmem:[#allocation2 + $0x314] sm:$0xf]  ;;  %v2600_v59 = vld [vmem:[#allocation5 + $0x68] sm:$0xf0] }
  0x5a   :  { %914 = vmatpush.bf16.msra.mxu0 %v2217_v35  ;;  %v2238_v35 = vld [vmem:[#allocation2 + $0x118] sm:$0xf0]  ;;  %v2574_v19 = vld [vmem:[#allocation5 + $0x30] sm:$0xf] }
  0x5b   :  { %927 = vmatpush.bf16.msra.mxu1 %v2281_v39  ;;  %v3019_v39 = vld [vmem:[#allocation2 + $0x84] sm:$0xf] }
  0x5c   :  { %940 = vmatpush.bf16.msra.mxu2 %v2345_v43  ;;  %908 = vmatmul.bf16.vlgmr.msrb.gmra.mxu3 %v3487_v1  ;;  %v3021_v1 = vld [vmem:[#allocation2 + $0x94] sm:$0xf]  ;;  %v2241_v43 = vor.u32 %v3037_v30, %v2238_v35  ;;  %v2169_v55 = vor.u32 %v3019_v39, %v2166_v40  ;;  %v3103_v30 = vld [vmem:[#allocation2 + $0x324] sm:$0xf] }
  0x5d   :  { %952 = vmatpush.bf16.msra.mxu3 %v2417_v51  ;;  %v2177_v38 = vor.u32 %v3021_v1, %v2174_v25  ;;  %v2542_v51 = vld [vmem:[#allocation2 + $0x378] sm:$0xf0]  ;;  %v3085_v35 = vld [vmem:[#allocation2 + $0x294] sm:$0xf]  ;;  %v3083_v40 = vld [vmem:[#allocation2 + $0x284] sm:$0xf] }
  0x5e   :  { %915 = vmatpush.bf16.msra.mxu0 %v2209_v48  ;;  %v3097_v48 = vld [vmem:[#allocation2 + $0x2f4] sm:$0xf]  ;;  %v2510_v1 = vld [vmem:[#allocation2 + $0x338] sm:$0xf0] }
  0x5f   :  { %928 = vmatpush.bf16.msra.mxu1 %v2273_v52  ;;  %v3051_v52 = vld [vmem:[#allocation2 + $0x184] sm:$0xf]  ;;  %v2481_v58 = vor.u32 %v3097_v48, %v2478_v49  ;;  %v3130_v48 = vld [vmem:[#allocation5 + $0x74] sm:$0xf0]  ;;  %v3129_v49 = vld [vmem:[#allocation5 + $0x74] sm:$0xf] }
  0x60   :  { %941 = vmatpush.bf16.msra.mxu2 %v2337_v57  ;;  %v2233_v57 = vor.u32 %v3035_v41, %v2230_v44  ;;  %v2422_v41 = vld [vmem:[#allocation2 + $0x288] sm:$0xf0] }
  0x61   :  { %953 = vmatpush.bf16.msra.mxu3 %v2409_v0  ;;  %v2297_v0 = vor.u32 %v3051_v52, %v2294_v53  ;;  %v2425_v44 = vor.u32 %v3083_v40, %v2422_v41  ;;  %v2608_v52 = vld [vmem:[#allocation5 + $0x78] sm:$0xf0]  ;;  %v2550_v40 = vld [vmem:[#allocation5] sm:$0xf]  ;;  %v3116_v41 = vld [vmem:[#allocation5 + $0x4] sm:$0xf0] }
  0x62   :  { %916 = vmatpush.bf16.msra.mxu0 %v2201_v61  ;;  %v2545_v61 = vor.u32 %v3113_v50, %v2542_v51  ;;  %v2611_v53 = vor.u32 %v3129_v49, %v2608_v52 }
  0x63   :  { %929 = vmatpush.bf16.msra.mxu1 %v2265_v3  ;;  %v3111_v3 = vld [vmem:[#allocation2 + $0x364] sm:$0xf] }
  0x64   :  { %942 = vmatpush.bf16.msra.mxu2 %v2329_v7  ;;  %v3067_v7 = vld [vmem:[#allocation2 + $0x204] sm:$0xf]  ;;  %v2537_v9 = vor.u32 %v3111_v3, %v2534_v4  ;;  %v3125_v3 = vld [vmem:[#allocation5 + $0x54] sm:$0xf] }
  0x65   :  { %954 = vmatpush.bf16.msra.mxu3 %v2401_v15  ;;  %v2361_v15 = vor.u32 %v3067_v7, %v2358_v8 }
  0x66   :  { %917 = vmatpush.bf16.msra.mxu0 %v2193_v11  ;;  %v2462_v11 = vld [vmem:[#allocation2 + $0x2d8] sm:$0xf0] }
  0x67   :  { %930 = vmatpush.bf16.msra.mxu1 %v2257_v16  ;;  %v2465_v16 = vor.u32 %v3093_v10, %v2462_v11  ;;  %v2582_v11 = vld [vmem:[#allocation5 + $0x40] sm:$0xf] }
  0x68   :  { %943 = vmatpush.bf16.msra.mxu2 %v2321_v20  ;;  %v3107_v20 = vld [vmem:[#allocation2 + $0x344] sm:$0xf] }
  0x69   :  { %955 = vmatpush.bf16.msra.mxu3 %v2393_v26  ;;  %v3087_v26 = vld [vmem:[#allocation2 + $0x2a4] sm:$0xf] }
  0x6a   :  { %918 = vmatpush.bf16.msra.mxu0 %v2185_v24  ;;  %v2446_v24 = vld [vmem:[#allocation2 + $0x2b8] sm:$0xf0] }
  0x6b   :  { %931 = vmatpush.bf16.msra.mxu1 %v2249_v28  ;;  %v2449_v25 = vor.u32 %v3089_v23, %v2446_v24  ;;  %v2438_v28 = vld [vmem:[#allocation2 + $0x2a8] sm:$0xf0] }
  0x6c   :  { %944 = vmatpush.bf16.msra.mxu2 %v2313_v34  ;;  %v2441_v33 = vor.u32 %v3087_v26, %v2438_v28  ;;  %v2505_v34 = vor.u32 %v3103_v30, %v2502_v31  ;;  %v2568_v28 = vld [vmem:[#allocation5 + $0x28] sm:$0xf0] }
  0x6d   :  { %956 = vmatpush.bf16.msra.mxu3 %v2385_v42  ;;  %v3099_v42 = vld [vmem:[#allocation2 + $0x304] sm:$0xf] }
  0x6e   :  { %919 = vmatpush.bf16.msra.mxu0 %v2177_v38  ;;  %v2494_v38 = vld [vmem:[#allocation2 + $0x318] sm:$0xf0] }
  0x6f   :  { %932 = vmatpush.bf16.msra.mxu1 %v2241_v43  ;;  %v2497_v39 = vor.u32 %v3101_v37, %v2494_v38  ;;  %v2486_v43 = vld [vmem:[#allocation2 + $0x308] sm:$0xf0]  ;;  %v2560_v37 = vld [vmem:[#allocation5 + $0x18] sm:$0xf0] }
  0x70   :  { %945 = vmatpush.bf16.msra.mxu2 %v2305_v47  ;;  %v2489_v45 = vor.u32 %v3099_v42, %v2486_v43  ;;  %v2606_v47 = vld [vmem:[#allocation5 + $0x70] sm:$0xf]  ;;  %v3115_v42 = vld [vmem:[#allocation5 + $0x4] sm:$0xf] }
  0x71   :  { %957 = vmatpush.bf16.msra.mxu3 %v2377_v56  ;;  %v2607_v51 = vor.u32 %v3130_v48, %v2606_v47 }
  0x72   :  { %920 = vmatpush.bf16.msra.mxu0 %v2169_v55  ;;  %v3521_v55 = vld [vmem:[%s3596_s2] sm:$0x3] }
  0x73   :  { %933 = vmatpush.bf16.msra.mxu1 %v2233_v57  ;;  %v2598_v57 = vld [vmem:[#allocation5 + $0x60] sm:$0xf] }
  0x74   :  { %946 = vmatpush.bf16.msra.mxu2 %v2297_v0  ;;  %v3126_v0 = vld [vmem:[#allocation5 + $0x54] sm:$0xf0] }
  0x75   :  { %921 = vmatmul.bf16.vlgmr.msra.gmra.mxu0 %v3489_v2  ;;  %958 = vmatpush.bf16.msra.mxu3 %v2369_v5  ;;  %v2521_v2 = vor.u32 %v3107_v20, %v2518_v21  ;;  %v2591_v5 = vor.u32 %v3126_v0, %v2590_v63  ;;  %v3122_v20 = vld [vmem:[#allocation5 + $0x34] sm:$0xf0]  ;;  %v3121_v21 = vld [vmem:[#allocation5 + $0x34] sm:$0xf] }
  0x76   :  { %965 = vmatpush.bf16.msrb.mxu0 %v2481_v58  ;;  %934 = vmatmul.bf16.vlgmr.msra.gmra.mxu1 %v3484_v54  ;;  %v3105_v54 = vld [vmem:[#allocation2 + $0x334] sm:$0xf]  ;;  %v3127_v58 = vld [vmem:[#allocation5 + $0x64] sm:$0xf] }
  0x77   :  { %978 = vmatpush.bf16.msrb.mxu1 %v2545_v61  ;;  %947 = vmatmul.bf16.vlgmr.msra.gmra.mxu2 %v3492_v13  ;;  %v2513_v13 = vor.u32 %v3105_v54, %v2510_v1  ;;  %v2603_v60 = vor.u32 %v3127_v58, %v2600_v59  ;;  %v220_v61 = vperm.slane %v3521_v55, 0  ;;  %v2566_v1 = vld [vmem:[#allocation5 + $0x20] sm:$0xf] }
  0x78   :  { %1229 = vmatpush.bf16.msrb.mxu2 %v2607_v51 }
  0x79   :  { %959 = vmatpush.bf16.msra.mxu3 %v2361_v15  ;;  %v2583_v15 = vor.u32 %v3124_v12, %v2582_v11  ;;  %v3144_v11 = vld [vmem:[#allocation5 + $0xe4] sm:$0xf0]  ;;  %v3143_v12 = vld [vmem:[#allocation5 + $0xe4] sm:$0xf] }
  0x7a   :  { %966 = vmatpush.bf16.msrb.mxu0 %v2473_v6  ;;  %v2592_v6 = vld [vmem:[#allocation5 + $0x58] sm:$0xf0] }
  0x7b   :  { %979 = vmatpush.bf16.msrb.mxu1 %v2537_v9  ;;  %v2595_v8 = vor.u32 %v3125_v3, %v2592_v6  ;;  %v2672_v3 = vld [vmem:[#allocation5 + $0xf8] sm:$0xf0] }
  0x7c   :  { %960 = vmatmul.bf16.vlgmr.msra.gmra.mxu3 %v3502_v27  ;;  %v2433_v27 = vor.u32 %v3085_v35, %v2430_v36  ;;  %v3117_v36 = vld [vmem:[#allocation5 + $0x14] sm:$0xf] }
  0x7e   :  { %967 = vmatpush.bf16.msrb.mxu0 %v2465_v16  ;;  %v2584_v16 = vld [vmem:[#allocation5 + $0x48] sm:$0xf0] }
  0x7f   :  { %980 = vmatpush.bf16.msrb.mxu1 %v2529_v17  ;;  %v2587_v17 = vor.u32 %v3123_v14, %v2584_v16 }
  0x82   :  { %968 = vmatpush.bf16.msrb.mxu0 %v2457_v22  ;;  %v2575_v22 = vor.u32 %v3122_v20, %v2574_v19  ;;  %v2654_v20 = vld [vmem:[#allocation5 + $0xd0] sm:$0xf] }
  0x83   :  { %981 = vmatpush.bf16.msrb.mxu1 %v2521_v2  ;;  %v2576_v2 = vld [vmem:[#allocation5 + $0x38] sm:$0xf0] }
  0x84   :  { %v2579_v24 = vor.u32 %v3121_v21, %v2576_v2  ;;  %v3142_v21 = vld [vmem:[#allocation5 + $0xd4] sm:$0xf0]  ;;  %v221_v2 = vperm.slane %v3521_v55, 1 }
  0x86   :  { %969 = vmatpush.bf16.msrb.mxu0 %v2449_v25  ;;  %v3120_v25 = vld [vmem:[#allocation5 + $0x24] sm:$0xf0] }
  0x87   :  { %982 = vmatpush.bf16.msrb.mxu1 %v2513_v13  ;;  %v3119_v13 = vld [vmem:[#allocation5 + $0x24] sm:$0xf]  ;;  %v2567_v26 = vor.u32 %v3120_v25, %v2566_v1  ;;  %v2655_v1 = vor.u32 %v3142_v21, %v2654_v20  ;;  %v2656_v25 = vld [vmem:[#allocation5 + $0xd8] sm:$0xf0] }
  0x88   :  { %v2571_v30 = vor.u32 %v3119_v13, %v2568_v28 }
  0x8a   :  { %970 = vmatpush.bf16.msrb.mxu0 %v2441_v33  ;;  %v2558_v33 = vld [vmem:[#allocation5 + $0x10] sm:$0xf] }
  0x8b   :  { %983 = vmatpush.bf16.msrb.mxu1 %v2505_v34  ;;  %v3118_v34 = vld [vmem:[#allocation5 + $0x14] sm:$0xf0] }
  0x8c   :  { %v2559_v35 = vor.u32 %v3118_v34, %v2558_v33  ;;  %v3139_v33 = vld [vmem:[#allocation5 + $0xc4] sm:$0xf] }
  0x8e   :  { %971 = vmatpush.bf16.msrb.mxu0 %v2433_v27 }
  0x8f   :  { %984 = vmatpush.bf16.msrb.mxu1 %v2497_v39  ;;  %v2563_v39 = vor.u32 %v3117_v36, %v2560_v37  ;;  %v2648_v36 = vld [vmem:[#allocation5 + $0xc8] sm:$0xf0] }
  0x90   :  { %v2651_v37 = vor.u32 %v3139_v33, %v2648_v36  ;;  %v2802_v33 = vld [vmem:[#allocation7 + $0xf8] sm:$0xf0]  ;;  %v3176_v36 = vld [vmem:[#allocation7 + $0xe4] sm:$0xf0] }
  0x92   :  { %972 = vmatpush.bf16.msrb.mxu0 %v2425_v44  ;;  %v2551_v44 = vor.u32 %v3116_v41, %v2550_v40 }
  0x93   :  { %985 = vmatpush.bf16.msrb.mxu1 %v2489_v45  ;;  %v2552_v45 = vld [vmem:[#allocation5 + $0x8] sm:$0xf0] }
  0x95   :  { %973 = vmatmul.bf16.vlgmr.msrb.gmra.mxu0 %v3504_v29  ;;  %v3128_v29 = vld [vmem:[#allocation5 + $0x64] sm:$0xf0] }
  0x96   :  { %986 = vmatmul.bf16.vlgmr.msrb.gmra.mxu1 %v3506_v32  ;;  %1255 = vmatpush.bf16.msra.mxu0 %v2611_v53  ;;  %v2599_v32 = vor.u32 %v3128_v29, %v2598_v57 }
  0x98   :  { %1230 = vmatpush.bf16.msrb.mxu2 %v2599_v32 }
  0x9a   :  { %1256 = vmatpush.bf16.msra.mxu0 %v2603_v60  ;;  %v2670_v60 = vld [vmem:[#allocation5 + $0xf0] sm:$0xf] }
  0x9c   :  { %1231 = vmatpush.bf16.msrb.mxu2 %v2591_v5 }
  0x9e   :  { %1257 = vmatpush.bf16.msra.mxu0 %v2595_v8 }
  0xa0   :  { %1232 = vmatpush.bf16.msrb.mxu2 %v2583_v15  ;;  %v2664_v15 = vld [vmem:[#allocation5 + $0xe8] sm:$0xf0] }
  0xa2   :  { %1258 = vmatpush.bf16.msra.mxu0 %v2587_v17  ;;  %v2667_v17 = vor.u32 %v3143_v12, %v2664_v15 }
  0xa4   :  { %1233 = vmatpush.bf16.msrb.mxu2 %v2575_v22  ;;  %v3141_v22 = vld [vmem:[#allocation5 + $0xd4] sm:$0xf] }
  0xa5   :  { %v2659_v28 = vor.u32 %v3141_v22, %v2656_v25 }
  0xa6   :  { %1259 = vmatpush.bf16.msra.mxu0 %v2579_v24 }
  0xa8   :  { %1234 = vmatpush.bf16.msrb.mxu2 %v2567_v26 }
  0xaa   :  { %1260 = vmatpush.bf16.msra.mxu0 %v2571_v30  ;;  %v2646_v30 = vld [vmem:[#allocation5 + $0xc0] sm:$0xf] }
  0xac   :  { %1235 = vmatpush.bf16.msrb.mxu2 %v2559_v35 }
  0xae   :  { %1261 = vmatpush.bf16.msra.mxu0 %v2563_v39  ;;  %v3137_v39 = vld [vmem:[#allocation5 + $0xb4] sm:$0xf] }
  0xb0   :  { %1236 = vmatpush.bf16.msrb.mxu2 %v2551_v44 }
  0xb2   :  { %v818_v46 = vpop.f32.mrf.mxu0 }
  0xb3   :  { %v831_v50 = vpop.f32.mrf.mxu1  ;;  %v819_v9 = vadd.f32 %v818_v46, %v220_v61  ;;  %v2555_v46 = vor.u32 %v3115_v42, %v2552_v45  ;;  %v3146_v61 = vld [vmem:[#allocation5 + $0xf4] sm:$0xf0]  ;;  %v2630_v45 = vld [vmem:[#allocation5 + $0xa0] sm:$0xf] }
  0xb4   :  { %v2671_v0 = vor.u32 %v3146_v61, %v2670_v60 }
  0xb5   :  { %v832_v18 = vadd.f32 %v831_v50, %v819_v9  ;;  %1262 = vmatpush.bf16.msra.mxu0 %v2555_v46  ;;  %v3136_v46 = vld [vmem:[#allocation5 + $0xa4] sm:$0xf0] }
  0xb6   :  { %1242 = vmatpush.bf16.msrb.mxu3 %v2671_v0 }
  0xba   :  { %v844_v56 = vpop.f32.mrf.mxu2  ;;  %v820_v62 = vpop.f32.mrf.mxu0 }
  0xbb   :  { %v833_v4 = vpop.f32.mrf.mxu1  ;;  %v845_v54 = vadd.f32 %v844_v56, %v832_v18  ;;  %v3145_v62 = vld [vmem:[#allocation5 + $0xf4] sm:$0xf] }
  0xbc   :  { %v2675_v6 = vor.u32 %v3145_v62, %v2672_v3  ;;  %v3131_v62 = vld [vmem:[#allocation5 + $0x84] sm:$0xf] }
  0xbe   :  { %1268 = vmatpush.bf16.msra.mxu1 %v2675_v6 }
  0xbf   :  { %v857_v7 = vpop.f32.mrf.mxu3 }
  0xc0   :  { %v858_v31 = vadd.f32 %v857_v7, %v845_v54 }
  0xc2   :  { %v846_v10 = vpop.f32.mrf.mxu2  ;;  %1269 = vmatpush.bf16.msra.mxu1 %v2667_v17 }
  0xc3   :  { %v2662_v10 = vld [vmem:[#allocation5 + $0xe0] sm:$0xf] }
  0xc4   :  { %v2663_v14 = vor.u32 %v3144_v11, %v2662_v10 }
  0xc6   :  { %1243 = vmatpush.bf16.msrb.mxu3 %v2663_v14  ;;  %1270 = vmatpush.bf16.msra.mxu1 %v2659_v28  ;;  %v3178_v28 = vld [vmem:[#allocation7 + $0xf4] sm:$0xf0] }
  0xc7   :  { %v859_v23 = vpop.f32.mrf.mxu3 }
  0xca   :  { %1244 = vmatpush.bf16.msrb.mxu3 %v2655_v1  ;;  %1271 = vmatpush.bf16.msra.mxu1 %v2651_v37  ;;  %v3175_v37 = vld [vmem:[#allocation7 + $0xe4] sm:$0xf] }
  0xd2   :  { %v870_v38 = vpop.f32.mrf.mxu0 }
  0xd3   :  { %v883_v27 = vpop.f32.mrf.mxu1  ;;  %v871_v43 = vadd.f32 %v870_v38, %v858_v31  ;;  %v3140_v31 = vld [vmem:[#allocation5 + $0xc4] sm:$0xf0]  ;;  %v2638_v38 = vld [vmem:[#allocation5 + $0xb0] sm:$0xf] }
  0xd4   :  { %v2647_v35 = vor.u32 %v3140_v31, %v2646_v30  ;;  %v3177_v30 = vld [vmem:[#allocation7 + $0xf4] sm:$0xf] }
  0xd5   :  { %v884_v47 = vadd.f32 %v883_v27, %v871_v43  ;;  %v3138_v27 = vld [vmem:[#allocation5 + $0xb4] sm:$0xf0]  ;;  %v2640_v43 = vld [vmem:[#allocation5 + $0xb8] sm:$0xf0] }
  0xd6   :  { %1245 = vmatpush.bf16.msrb.mxu3 %v2647_v35  ;;  %v2639_v42 = vor.u32 %v3138_v27, %v2638_v38  ;;  %v2643_v44 = vor.u32 %v3137_v39, %v2640_v43  ;;  %v2792_v35 = vld [vmem:[#allocation7 + $0xe0] sm:$0xf]  ;;  %v2794_v38 = vld [vmem:[#allocation7 + $0xe8] sm:$0xf0]  ;;  %v2736_v39 = vld [vmem:[#allocation7 + $0x70] sm:$0xf] }
  0xd7   :  { %v2797_v27 = vor.u32 %v3175_v37, %v2794_v38  ;;  %v2738_v43 = vld [vmem:[#allocation7 + $0x78] sm:$0xf0] }
  0xd8   :  { %1272 = vmatpush.bf16.msra.mxu1 %v2643_v44 }
  0xda   :  { %v896_v48 = vpop.f32.mrf.mxu2  ;;  %v872_v50 = vpop.f32.mrf.mxu0  ;;  %1246 = vmatpush.bf16.msrb.mxu3 %v2639_v42 }
  0xdb   :  { %v897_v49 = vadd.f32 %v896_v48, %v884_v47  ;;  %v885_v51 = vpop.f32.mrf.mxu1  ;;  %v3135_v47 = vld [vmem:[#allocation5 + $0xa4] sm:$0xf]  ;;  %v2632_v50 = vld [vmem:[#allocation5 + $0xa8] sm:$0xf0] }
  0xdc   :  { %v2635_v51 = vor.u32 %v3135_v47, %v2632_v50  ;;  %v3173_v47 = vld [vmem:[#allocation7 + $0xd4] sm:$0xf] }
  0xdd   :  { %v2546_v52 = vmul.f32 -1.442695, %v897_v49  ;;  %v2631_v49 = vor.u32 %v3136_v46, %v2630_v45  ;;  %v2784_v45 = vld [vmem:[#allocation7 + $0xd0] sm:$0xf]  ;;  %v3174_v46 = vld [vmem:[#allocation7 + $0xd4] sm:$0xf0] }
  0xde   :  { %1273 = vmatpush.bf16.msra.mxu1 %v2635_v51  ;;  %v2728_v51 = vld [vmem:[#allocation7 + $0x60] sm:$0xf] }
  0xdf   :  { %3235 = vpow2.f32 %v2546_v52  ;;  %v909_v53 = vpop.f32.mrf.mxu3  ;;  %1247 = vmatpush.bf16.msrb.mxu3 %v2631_v49  ;;  %v2786_v49 = vld [vmem:[#allocation7 + $0xd8] sm:$0xf0] }
  0xe0   :  { %v910_v34 = vadd.f32 %v909_v53, %v221_v2  ;;  %v2622_v53 = vld [vmem:[#allocation5 + $0x90] sm:$0xf]  ;;  %v2789_v50 = vor.u32 %v3173_v47, %v2786_v49  ;;  %v3163_v47 = vld [vmem:[#allocation7 + $0x84] sm:$0xf]  ;;  %v2746_v49 = vld [vmem:[#allocation7 + $0x88] sm:$0xf0] }
  0xe2   :  { %v898_v56 = vpop.f32.mrf.mxu2 }
  0xe3   :  { %v3134_v56 = vld [vmem:[#allocation5 + $0x94] sm:$0xf0] }
  0xe5   :  { %v3236_v57 = vpop.eup %3235 }
  0xe6   :  { %v997_v29 = vadd.f32 1.0, %v3236_v57  ;;  %v3133_v57 = vld [vmem:[#allocation5 + $0x94] sm:$0xf] }
  0xe7   :  { %v911_v58 = vpop.f32.mrf.mxu3 }
  0xe8   :  { %3237 = vrcp.f32 %v997_v29  ;;  %v1008_v7 = vand.u32 2147483647, %v997_v29  ;;  %v1010_v8 = vand.u32 2147483648, %v997_v29  ;;  %vm1004_vm1 = vweird.f32 %v997_v29  ;;  %v2624_v58 = vld [vmem:[#allocation5 + $0x98] sm:$0xf0] }
  0xe9   :  { %v2627_v61 = vor.u32 %v3133_v57, %v2624_v58  ;;  %v2730_v57 = vld [vmem:[#allocation7 + $0x68] sm:$0xf0]  ;;  %v2776_v58 = vld [vmem:[#allocation7 + $0xc0] sm:$0xf] }
  0xea   :  { %vm1009_vm3 = vcmp.eq.f32.partialorder %v1008_v7, 8.507059e+37  ;;  %v1011_v18 = vor.u32 1.1754944e-38, %v1010_v8 }
  0xeb   :  { %1274 = vmatpush.bf16.msra.mxu1 %v2627_v61  ;;  %v2778_v61 = vld [vmem:[#allocation7 + $0xc8] sm:$0xf0] }
  0xee   :  { %v3238_v32 = vpop.eup %3237 }
  0xef   :  { %v1000_v59 = vmul.f32 %v3238_v32, %v997_v29  ;;  %vm1005_vm0 = vweird.f32 %v3238_v32  ;;  %v2623_v29 = vor.u32 %v3134_v56, %v2622_v53  ;;  %v3159_v53 = vld [vmem:[#allocation7 + $0x64] sm:$0xf] }
  0xf0   :  { %vm1006_vm2 = vmor %vm1004_vm1, %vm1005_vm0 }
  0xf1   :  { %v1001_v4 = vsub.f32 1.0, %v1000_v59  ;;  %v3132_v59 = vld [vmem:[#allocation5 + $0x84] sm:$0xf0]  ;;  %1248 = vmatpush.bf16.msrb.mxu3 %v2623_v29  ;;  %v2733_v29 = vor.u32 %v3159_v53, %v2730_v57  ;;  %v2690_v57 = vld [vmem:[#allocation7 + $0x18] sm:$0xf0] }
  0xf2   :  { %v922_v63 = vpop.f32.mrf.mxu0 }
  0xf3   :  { %v935_v5 = vpop.f32.mrf.mxu1  ;;  %v1002_v9 = vmul.f32 %v3238_v32, %v1001_v4  ;;  %v923_v40 = vadd.f32 %v922_v63, %v910_v34  ;;  %v2616_v63 = vld [vmem:[#allocation5 + $0x88] sm:$0xf0]  ;;  %v2805_v34 = vor.u32 %v3177_v30, %v2802_v33 }
  0xf4   :  { %v2619_v4 = vor.u32 %v3131_v62, %v2616_v63  ;;  %v2720_v63 = vld [vmem:[#allocation7 + $0x50] sm:$0xf] }
  0xf5   :  { %v1003_v16 = vadd.f32 %v3238_v32, %v1002_v9  ;;  %v936_v48 = vadd.f32 %v935_v5, %v923_v40  ;;  %v3162_v40 = vld [vmem:[#allocation7 + $0x74] sm:$0xf0] }
  0xf6   :  { %1275 = vmatpush.bf16.msra.mxu1 %v2619_v4  ;;  %v2737_v42 = vor.u32 %v3162_v40, %v2736_v39  ;;  %v3152_v39 = vld [vmem:[#allocation7 + $0x24] sm:$0xf0]  ;;  %v3151_v40 = vld [vmem:[#allocation7 + $0x24] sm:$0xf] }
  0xf7   :  { %v1007_v19 = vsel %vm1006_vm2, %v3238_v32, %v1003_v16  ;;  %v2614_v32 = vld [vmem:[#allocation5 + $0x80] sm:$0xf] }
  0xf8   :  { %v1012_v23 = vsel %vm1009_vm3, %v1011_v18, %v1007_v19  ;;  %v2615_v0 = vor.u32 %v3132_v59, %v2614_v32  ;;  %1519 = vmatpush.bf16.msra.mxu2 %v2737_v42  ;;  %v3172_v32 = vld [vmem:[#allocation7 + $0xc4] sm:$0xf0]  ;;  %v3171_v59 = vld [vmem:[#allocation7 + $0xc4] sm:$0xf] }
  0xf9   :  { %v1029_v13 = vpack.c.bf16 %v1012_v23, %v1012_v23  ;;  %v2781_v62 = vor.u32 %v3171_v59, %v2778_v61  ;;  %v2680_v61 = vld [vmem:[#allocation7] sm:$0xf] }
  0xfa   :  { %v924_v24 = vpop.f32.mrf.mxu0  ;;  %v948_v54 = vpop.f32.mrf.mxu2  ;;  %1249 = vmatpush.bf16.msrb.mxu3 %v2615_v0  ;;  %1558 = vmatpush.bf16.msrb.mxu1 %v2805_v34  ;;  %v3158_v0 = vld [vmem:[#allocation7 + $0x54] sm:$0xf0]  ;;  %v2752_v34 = vld [vmem:[#allocation7 + $0x90] sm:$0xf] }
  0xfb   :  { %v937_v26 = vpop.f32.mrf.mxu1  ;;  %1237 = vmatmul.bf16.vlgmr.msrb.gmra.mxu2 %v1029_v13  ;;  %1263 = vmatmul.bf16.vlgmr.msra.gmra.mxu0 %v1029_v13  ;;  %v949_v60 = vadd.f32 %v948_v54, %v936_v48  ;;  %v2785_v48 = vor.u32 %v3174_v46, %v2784_v45  ;;  %v2721_v4 = vor.u32 %v3158_v0, %v2720_v63  ;;  %v2744_v45 = vld [vmem:[#allocation7 + $0x80] sm:$0xf]  ;;  %v3164_v46 = vld [vmem:[#allocation7 + $0x84] sm:$0xf0]  ;;  %v3147_v63 = vld [vmem:[#allocation7 + $0x4] sm:$0xf] }
  0xfc   :  { %v2800_v26 = vld [vmem:[#allocation7 + $0xf0] sm:$0xf] }
  0xfd   :  { %v2801_v31 = vor.u32 %v3178_v28, %v2800_v26  ;;  %v3153_v26 = vld [vmem:[#allocation7 + $0x34] sm:$0xf]  ;;  %v1063_v28 = vld [vmem:[%s3598_s4] sm:$0x3] }
  0xfe   :  { %1559 = vmatpush.bf16.msrb.mxu1 %v2797_v27  ;;  %v2696_v27 = vld [vmem:[#allocation7 + $0x20] sm:$0xf] }
  0xff   :  { %v961_v55 = vpop.f32.mrf.mxu3  ;;  %1532 = vmatpush.bf16.msra.mxu3 %v2801_v31  ;;  %v2706_v31 = vld [vmem:[#allocation7 + $0x38] sm:$0xf0]  ;;  %v2697_v42 = vor.u32 %v3152_v39, %v2696_v27  ;;  %v3209_v27 = vld [vmem:[#allocation8 + $0xf4] sm:$0xf] }
 0x100   :  { %v962_v3 = vadd.f32 %v961_v55, %v949_v60  ;;  %v2793_v55 = vor.u32 %v3176_v36, %v2792_v35  ;;  %v2777_v60 = vor.u32 %v3172_v32, %v2776_v58  ;;  %v2709_v33 = vor.u32 %v3153_v26, %v2706_v31  ;;  %v3166_v35 = vld [vmem:[#allocation7 + $0x94] sm:$0xf0]  ;;  %v3165_v36 = vld [vmem:[#allocation7 + $0x94] sm:$0xf] }
 0x101   :  { %v2753_v37 = vor.u32 %v3166_v35, %v2752_v34  ;;  %v1065_v32 = vperm.slane %v1063_v28, 0 }
 0x102   :  { %v950_v41 = vpop.f32.mrf.mxu2  ;;  %1560 = vmatpush.bf16.msrb.mxu1 %v2789_v50  ;;  %v2688_v50 = vld [vmem:[#allocation7 + $0x10] sm:$0xf] }
 0x103   :  { %v3161_v41 = vld [vmem:[#allocation7 + $0x74] sm:$0xf]  ;;  %1533 = vmatpush.bf16.msra.mxu3 %v2793_v55  ;;  %v2754_v55 = vld [vmem:[#allocation7 + $0x98] sm:$0xf0] }
 0x104   :  { %v2741_v44 = vor.u32 %v3161_v41, %v2738_v43  ;;  %v2757_v38 = vor.u32 %v3165_v36, %v2754_v55  ;;  %v1066_v41 = vperm.slane %v1063_v28, 1  ;;  %v2698_v43 = vld [vmem:[#allocation7 + $0x28] sm:$0xf0]  ;;  %v2930_v55 = vld [vmem:[#allocation8 + $0xf0] sm:$0xf] }
 0x106   :  { %1545 = vmatpush.bf16.msrb.mxu0 %v2741_v44  ;;  %1561 = vmatpush.bf16.msrb.mxu1 %v2781_v62  ;;  %v2701_v44 = vor.u32 %v3151_v40, %v2698_v43  ;;  %v3148_v62 = vld [vmem:[#allocation7 + $0x4] sm:$0xf0]  ;;  %v2932_v40 = vld [vmem:[#allocation8 + $0xf8] sm:$0xf0] }
 0x107   :  { %v963_v52 = vpop.f32.mrf.mxu3  ;;  %1534 = vmatpush.bf16.msra.mxu3 %v2785_v48  ;;  %v2745_v48 = vor.u32 %v3164_v46, %v2744_v45  ;;  %v2681_v0 = vor.u32 %v3148_v62, %v2680_v61  ;;  %v3208_v43 = vld [vmem:[#allocation8 + $0xe4] sm:$0xf0]  ;;  %v3207_v45 = vld [vmem:[#allocation8 + $0xe4] sm:$0xf]  ;;  %v2924_v46 = vld [vmem:[#allocation8 + $0xe8] sm:$0xf0] }
 0x108   :  { %v3160_v52 = vld [vmem:[#allocation7 + $0x64] sm:$0xf0]  ;;  %v3191_v62 = vld [vmem:[#allocation8 + $0x64] sm:$0xf] }
 0x109   :  { %v2729_v56 = vor.u32 %v3160_v52, %v2728_v51  ;;  %v3150_v51 = vld [vmem:[#allocation7 + $0x14] sm:$0xf0]  ;;  %v2749_v52 = vor.u32 %v3163_v47, %v2746_v49  ;;  %v2927_v47 = vor.u32 %v3207_v45, %v2924_v46  ;;  %v3192_v61 = vld [vmem:[#allocation8 + $0x64] sm:$0xf0]  ;;  %v2826_v46 = vld [vmem:[#allocation8 + $0x20] sm:$0xf] }
 0x10a   :  { %1546 = vmatpush.bf16.msrb.mxu0 %v2733_v29  ;;  %v2689_v53 = vor.u32 %v3150_v51, %v2688_v50  ;;  %v3194_v49 = vld [vmem:[#allocation8 + $0x74] sm:$0xf0]  ;;  %v3193_v50 = vld [vmem:[#allocation8 + $0x74] sm:$0xf] }
 0x10b   :  { %1520 = vmatpush.bf16.msra.mxu2 %v2729_v56  ;;  %1535 = vmatpush.bf16.msra.mxu3 %v2777_v60  ;;  %v3149_v56 = vld [vmem:[#allocation7 + $0x14] sm:$0xf] }
 0x10c   :  { %v2693_v58 = vor.u32 %v3149_v56, %v2690_v57  ;;  %v2914_v56 = vld [vmem:[#allocation8 + $0xd0] sm:$0xf]  ;;  %v3206_v57 = vld [vmem:[#allocation8 + $0xd4] sm:$0xf0] }
 0x10f   :  { %1521 = vmatpush.bf16.msra.mxu2 %v2721_v4 }
 0x112   :  { %v974_v5 = vpop.f32.mrf.mxu0 }
 0x113   :  { %v975_v6 = vadd.f32 %v974_v5, %v962_v3  ;;  %v987_v7 = vpop.f32.mrf.mxu1  ;;  %v3157_v3 = vld [vmem:[#allocation7 + $0x54] sm:$0xf]  ;;  %v2722_v5 = vld [vmem:[#allocation7 + $0x58] sm:$0xf0] }
 0x115   :  { %v988_v8 = vadd.f32 %v987_v7, %v975_v6  ;;  %v2725_v6 = vor.u32 %v3157_v3, %v2722_v5  ;;  %v2768_v7 = vld [vmem:[#allocation7 + $0xb0] sm:$0xf]  ;;  %v2682_v3 = vld [vmem:[#allocation7 + $0x8] sm:$0xf0] }
 0x116   :  { %v2685_v5 = vor.u32 %v3147_v63, %v2682_v3 }
 0x117   :  { %v2547_v9 = vmul.f32 -1.442695, %v988_v8  ;;  %v3170_v8 = vld [vmem:[#allocation7 + $0xb4] sm:$0xf0]  ;;  %1547 = vmatpush.bf16.msrb.mxu0 %v2725_v6 }
 0x119   :  { %3239 = vpow2.f32 %v2547_v9  ;;  %v3169_v9 = vld [vmem:[#allocation7 + $0xb4] sm:$0xf] }
 0x11a   :  { %v976_v10 = vpop.f32.mrf.mxu0 }
 0x11b   :  { %v989_v11 = vpop.f32.mrf.mxu1  ;;  %v2769_v10 = vor.u32 %v3170_v8, %v2768_v7 }
 0x11c   :  { %v2770_v11 = vld [vmem:[#allocation7 + $0xb8] sm:$0xf0] }
 0x11d   :  { %1536 = vmatpush.bf16.msra.mxu3 %v2769_v10 }
 0x11f   :  { %v3240_v12 = vpop.eup %3239 }
 0x120   :  { %v998_v14 = vadd.f32 1.0, %v3240_v12  ;;  %v2773_v12 = vor.u32 %v3169_v9, %v2770_v11 }
 0x122   :  { %3241 = vrcp.f32 %v998_v14  ;;  %v1025_v18 = vand.u32 2147483648, %v998_v14  ;;  %v1023_v20 = vand.u32 2147483647, %v998_v14  ;;  %vm1019_vm5 = vweird.f32 %v998_v14  ;;  %1562 = vmatpush.bf16.msrb.mxu1 %v2773_v12 }
 0x124   :  { %v1026_v22 = vor.u32 1.1754944e-38, %v1025_v18  ;;  %vm1024_vm7 = vcmp.eq.f32.partialorder %v1023_v20, 8.507059e+37  ;;  %v2714_v18 = vld [vmem:[#allocation7 + $0x48] sm:$0xf0]  ;;  %v2760_v20 = vld [vmem:[#allocation7 + $0xa0] sm:$0xf] }
 0x128   :  { %v3242_v15 = vpop.eup %3241 }
 0x129   :  { %v1015_v16 = vmul.f32 %v3242_v15, %v998_v14  ;;  %vm1020_vm4 = vweird.f32 %v3242_v15  ;;  %v2712_v14 = vld [vmem:[#allocation7 + $0x40] sm:$0xf] }
 0x12a   :  { %vm1021_vm6 = vmor %vm1019_vm5, %vm1020_vm4 }
 0x12b   :  { %v1016_v17 = vsub.f32 1.0, %v1015_v16  ;;  %v3155_v16 = vld [vmem:[#allocation7 + $0x44] sm:$0xf] }
 0x12d   :  { %v1017_v19 = vmul.f32 %v3242_v15, %v1016_v17 }
 0x12f   :  { %v1018_v21 = vadd.f32 %v3242_v15, %v1017_v19  ;;  %v2717_v19 = vor.u32 %v3155_v16, %v2714_v18 }
 0x131   :  { %v1022_v2 = vsel %vm1021_vm6, %v3242_v15, %v1018_v21  ;;  %v3156_v15 = vld [vmem:[#allocation7 + $0x44] sm:$0xf0]  ;;  %1548 = vmatpush.bf16.msrb.mxu0 %v2717_v19 }
 0x132   :  { %v1027_v23 = vsel %vm1024_vm7, %v1026_v22, %v1022_v2  ;;  %v2713_v17 = vor.u32 %v3156_v15, %v2712_v14  ;;  %v3168_v21 = vld [vmem:[#allocation7 + $0xa4] sm:$0xf0]  ;;  %v3167_v22 = vld [vmem:[#allocation7 + $0xa4] sm:$0xf] }
 0x133   :  { %v1030_v24 = vpack.c.bf16 %v1027_v23, %v1027_v23  ;;  %v2761_v2 = vor.u32 %v3168_v21, %v2760_v20  ;;  %v2762_v23 = vld [vmem:[#allocation7 + $0xa8] sm:$0xf0] }
 0x134   :  { %1522 = vmatpush.bf16.msra.mxu2 %v2713_v17 }
 0x135   :  { %1250 = vmatmul.bf16.vlgmr.msrb.gmra.mxu3 %v1030_v24  ;;  %1276 = vmatmul.bf16.vlgmr.msra.gmra.mxu1 %v1030_v24  ;;  %v2765_v24 = vor.u32 %v3167_v22, %v2762_v23 }
 0x136   :  { %1537 = vmatpush.bf16.msra.mxu3 %v2761_v2  ;;  %1549 = vmatpush.bf16.msrb.mxu0 %v2709_v33 }
 0x137   :  { %1563 = vmatpush.bf16.msrb.mxu1 %v2765_v24 }
 0x13a   :  { %1538 = vmatpush.bf16.msra.mxu3 %v2753_v37  ;;  %1550 = vmatpush.bf16.msrb.mxu0 %v2701_v44 }
 0x13b   :  { %1564 = vmatpush.bf16.msrb.mxu1 %v2757_v38  ;;  %v3210_v38 = vld [vmem:[#allocation8 + $0xf4] sm:$0xf0] }
 0x13c   :  { %v2931_v39 = vor.u32 %v3210_v38, %v2930_v55  ;;  %v2836_v38 = vld [vmem:[#allocation8 + $0x38] sm:$0xf0] }
 0x13e   :  { %1539 = vmatpush.bf16.msra.mxu3 %v2745_v48  ;;  %1551 = vmatpush.bf16.msrb.mxu0 %v2693_v58  ;;  %v2866_v48 = vld [vmem:[#allocation8 + $0x70] sm:$0xf]  ;;  %v2915_v58 = vor.u32 %v3206_v57, %v2914_v56  ;;  %v3196_v56 = vld [vmem:[#allocation8 + $0x84] sm:$0xf0]  ;;  %v3195_v57 = vld [vmem:[#allocation8 + $0x84] sm:$0xf] }
 0x13f   :  { %1565 = vmatpush.bf16.msrb.mxu1 %v2749_v52  ;;  %v2867_v51 = vor.u32 %v3194_v49, %v2866_v48  ;;  %v2868_v52 = vld [vmem:[#allocation8 + $0x78] sm:$0xf0]  ;;  %v3183_v48 = vld [vmem:[#allocation8 + $0x24] sm:$0xf] }
 0x142   :  { %1552 = vmatpush.bf16.msrb.mxu0 %v2685_v5  ;;  %1822 = vmatpush.bf16.msrb.mxu3 %v2931_v39  ;;  %v3204_v5 = vld [vmem:[#allocation8 + $0xc4] sm:$0xf0] }
 0x178   :  { %v3525_v54 = vpop.f32.mrf.mxu0 }
 0x179   :  { %v1265_v29 = vadd.f32 %v3525_v54, %v1066_v41  ;;  %v2935_v41 = vor.u32 %v3209_v27, %v2932_v40  ;;  %v2882_v40 = vld [vmem:[#allocation8 + $0x90] sm:$0xf] }
 0x17b   :  { %1848 = vmatpush.bf16.msra.mxu1 %v2935_v41  ;;  %v3198_v41 = vld [vmem:[#allocation8 + $0x94] sm:$0xf0] }
 0x17e   :  { %v3527_v1 = vpop.f32.mrf.mxu2 }
 0x17f   :  { %v1239_v6 = vadd.f32 %v3527_v1, %v1065_v32  ;;  %1849 = vmatpush.bf16.msra.mxu1 %v2927_v47  ;;  %v2916_v32 = vld [vmem:[#allocation8 + $0xd8] sm:$0xf0]  ;;  %v3184_v47 = vld [vmem:[#allocation8 + $0x24] sm:$0xf0] }
 0x180   :  { %v1266_v25 = vpop.f32.mrf.mxu0 }
 0x181   :  { %v2704_v25 = vld [vmem:[#allocation7 + $0x30] sm:$0xf] }
 0x186   :  { %v1240_v13 = vpop.f32.mrf.mxu2 }
 0x187   :  { %v3154_v13 = vld [vmem:[#allocation7 + $0x34] sm:$0xf0] }
 0x188   :  { %v2705_v30 = vor.u32 %v3154_v13, %v2704_v25 }
 0x18a   :  { %1523 = vmatpush.bf16.msra.mxu2 %v2705_v30 }
 0x18e   :  { %1524 = vmatpush.bf16.msra.mxu2 %v2697_v42  ;;  %v2922_v42 = vld [vmem:[#allocation8 + $0xe0] sm:$0xf] }
 0x18f   :  { %v2923_v44 = vor.u32 %v3208_v43, %v2922_v42  ;;  %v3197_v42 = vld [vmem:[#allocation8 + $0x94] sm:$0xf]  ;;  %v2883_v43 = vor.u32 %v3198_v41, %v2882_v40 }
 0x191   :  { %1823 = vmatpush.bf16.msrb.mxu3 %v2923_v44  ;;  %v2884_v44 = vld [vmem:[#allocation8 + $0x98] sm:$0xf0] }
 0x192   :  { %1525 = vmatpush.bf16.msra.mxu2 %v2689_v53  ;;  %v2871_v53 = vor.u32 %v3193_v50, %v2868_v52  ;;  %v2887_v45 = vor.u32 %v3197_v42, %v2884_v44  ;;  %v2827_v50 = vor.u32 %v3184_v47, %v2826_v46  ;;  %v3226_v47 = vld [vmem:[%s3603_s9 + $0x78] sm:$0xff] }
 0x194   :  { %1835 = vmatpush.bf16.msra.mxu0 %v2871_v53  ;;  %v2874_v53 = vld [vmem:[#allocation8 + $0x80] sm:$0xf] }
 0x195   :  { %1824 = vmatpush.bf16.msrb.mxu3 %v2915_v58  ;;  %v2876_v58 = vld [vmem:[#allocation8 + $0x88] sm:$0xf0] }
 0x196   :  { %1526 = vmatpush.bf16.msra.mxu2 %v2681_v0  ;;  %v2860_v0 = vld [vmem:[#allocation8 + $0x68] sm:$0xf0] }
 0x197   :  { %v2863_v3 = vor.u32 %v3191_v62, %v2860_v0  ;;  %v2879_v62 = vor.u32 %v3195_v57, %v2876_v58  ;;  %v3181_v0 = vld [vmem:[#allocation8 + $0x14] sm:$0xf]  ;;  %v3215_v57 = vld [vmem:[%s3603_s9 + $0x20] sm:$0xff]  ;;  %v3214_v58 = vld [vmem:[%s3603_s9 + $0x18] sm:$0xff] }
 0x199   :  { %1836 = vmatpush.bf16.msra.mxu0 %v2863_v3  ;;  %v2820_v3 = vld [vmem:[#allocation8 + $0x18] sm:$0xf0] }
 0x19a   :  { %1809 = vmatpush.bf16.msrb.mxu2 %v2867_v51  ;;  %v2828_v51 = vld [vmem:[#allocation8 + $0x28] sm:$0xf0] }
 0x19b   :  { %v2831_v52 = vor.u32 %v3183_v48, %v2828_v51  ;;  %v3225_v48 = vld [vmem:[%s3603_s9 + $0x70] sm:$0xff] }
 0x19c   :  { %v3217_v51 = vld [vmem:[%s3603_s9 + $0x30] sm:$0xff] }
 0x1b2   :  { %v1277_v59 = vpop.f32.mrf.mxu1 }
 0x1b3   :  { %v1278_v60 = vadd.f32 %v1277_v59, %v1265_v29  ;;  %v3205_v29 = vld [vmem:[#allocation8 + $0xd4] sm:$0xf] }
 0x1b4   :  { %v2919_v59 = vor.u32 %v3205_v29, %v2916_v32  ;;  %v2875_v29 = vor.u32 %v3196_v56, %v2874_v53  ;;  %v2818_v32 = vld [vmem:[#allocation8 + $0x10] sm:$0xf]  ;;  %v3216_v53 = vld [vmem:[%s3603_s9 + $0x28] sm:$0xff]  ;;  %v3222_v56 = vld [vmem:[%s3603_s9 + $0x58] sm:$0xff] }
 0x1b5   :  { %v2677_v4 = vmul.f32 -1.442695, %v1278_v60  ;;  %v2858_v60 = vld [vmem:[#allocation8 + $0x60] sm:$0xf] }
 0x1b6   :  { %v2859_v63 = vor.u32 %v3192_v61, %v2858_v60  ;;  %1850 = vmatpush.bf16.msra.mxu1 %v2919_v59  ;;  %v3182_v59 = vld [vmem:[#allocation8 + $0x14] sm:$0xf0] }
 0x1b7   :  { %3243 = vpow2.f32 %v2677_v4  ;;  %v2906_v4 = vld [vmem:[#allocation8 + $0xc0] sm:$0xf] }
 0x1b8   :  { %v1251_v54 = vpop.f32.mrf.mxu3  ;;  %1810 = vmatpush.bf16.msrb.mxu2 %v2859_v63  ;;  %v2819_v63 = vor.u32 %v3182_v59, %v2818_v32  ;;  %v1643_v59 = vld [vmem:[%s3602_s8] sm:$0x3] }
 0x1b9   :  { %v1252_v7 = vadd.f32 %v1251_v54, %v1239_v6  ;;  %v3203_v6 = vld [vmem:[#allocation8 + $0xc4] sm:$0xf]  ;;  %v2907_v54 = vor.u32 %v3204_v5, %v2906_v4  ;;  %v2823_v5 = vor.u32 %v3181_v0, %v2820_v3  ;;  %v3212_v0 = vld [vmem:[%s3603_s9 + $0x8] sm:$0xff] }
 0x1ba   :  { %v1279_v8 = vpop.f32.mrf.mxu1 }
 0x1bb   :  { %v2676_v9 = vmul.f32 -1.442695, %v1252_v7  ;;  %v2908_v7 = vld [vmem:[#allocation8 + $0xc8] sm:$0xf0]  ;;  %1825 = vmatpush.bf16.msrb.mxu3 %v2907_v54 }
 0x1bc   :  { %v2911_v8 = vor.u32 %v3203_v6, %v2908_v7 }
 0x1bd   :  { %v3244_v10 = vpop.eup %3243  ;;  %3245 = vpow2.f32 %v2676_v9  ;;  %v2850_v9 = vld [vmem:[#allocation8 + $0x50] sm:$0xf] }
 0x1be   :  { %v1288_v11 = vadd.f32 1.0, %v3244_v10  ;;  %v3190_v10 = vld [vmem:[#allocation8 + $0x54] sm:$0xf0]  ;;  %1851 = vmatpush.bf16.msra.mxu1 %v2911_v8  ;;  %v2810_v8 = vld [vmem:[#allocation8] sm:$0xf] }
 0x1c0   :  { %3247 = vrcp.f32 %v1288_v11  ;;  %v1253_v12 = vpop.f32.mrf.mxu3  ;;  %v1315_v19 = vand.u32 2147483648, %v1288_v11  ;;  %v1313_v20 = vand.u32 2147483647, %v1288_v11  ;;  %vm1309_vm9 = vweird.f32 %v1288_v11 }
 0x1c1   :  { %v2851_v12 = vor.u32 %v3190_v10, %v2850_v9  ;;  %v3180_v9 = vld [vmem:[#allocation8 + $0x4] sm:$0xf0]  ;;  %v3179_v10 = vld [vmem:[#allocation8 + $0x4] sm:$0xf] }
 0x1c2   :  { %v1316_v23 = vor.u32 1.1754944e-38, %v1315_v19  ;;  %vm1314_vm11 = vcmp.eq.f32.partialorder %v1313_v20, 8.507059e+37 }
 0x1c3   :  { %v3246_v14 = vpop.eup %3245  ;;  %1811 = vmatpush.bf16.msrb.mxu2 %v2851_v12  ;;  %v2812_v12 = vld [vmem:[#allocation8 + $0x8] sm:$0xf0] }
 0x1c4   :  { %v1287_v15 = vadd.f32 1.0, %v3246_v14  ;;  %v2852_v14 = vld [vmem:[#allocation8 + $0x58] sm:$0xf0] }
 0x1c6   :  { %v3248_v16 = vpop.eup %3247  ;;  %3249 = vrcp.f32 %v1287_v15  ;;  %v1300_v26 = vand.u32 2147483648, %v1287_v15  ;;  %v1298_v31 = vand.u32 2147483647, %v1287_v15  ;;  %vm1294_vm13 = vweird.f32 %v1287_v15 }
 0x1c7   :  { %v1305_v17 = vmul.f32 %v3248_v16, %v1288_v11  ;;  %vm1310_vm8 = vweird.f32 %v3248_v16  ;;  %v3189_v11 = vld [vmem:[#allocation8 + $0x54] sm:$0xf] }
 0x1c8   :  { %vm1311_vm10 = vmor %vm1309_vm9, %vm1310_vm8  ;;  %v1301_v34 = vor.u32 1.1754944e-38, %v1300_v26  ;;  %vm1299_vm15 = vcmp.eq.f32.partialorder %v1298_v31, 8.507059e+37  ;;  %v3200_v26 = vld [vmem:[#allocation8 + $0xa4] sm:$0xf0]  ;;  %v2892_v31 = vld [vmem:[#allocation8 + $0xa8] sm:$0xf0] }
 0x1c9   :  { %v1306_v18 = vsub.f32 1.0, %v1305_v17  ;;  %v3202_v17 = vld [vmem:[#allocation8 + $0xb4] sm:$0xf0] }
 0x1cb   :  { %v1307_v1 = vmul.f32 %v3248_v16, %v1306_v18  ;;  %v3201_v18 = vld [vmem:[#allocation8 + $0xb4] sm:$0xf] }
 0x1cc   :  { %v3250_v21 = vpop.eup %3249 }
 0x1cd   :  { %v1290_v22 = vmul.f32 %v3250_v21, %v1287_v15  ;;  %v1308_v2 = vadd.f32 %v3248_v16, %v1307_v1  ;;  %vm1295_vm12 = vweird.f32 %v3250_v21  ;;  %v2855_v15 = vor.u32 %v3189_v11, %v2852_v14  ;;  %v2900_v1 = vld [vmem:[#allocation8 + $0xb8] sm:$0xf0] }
 0x1ce   :  { %vm1296_vm14 = vmor %vm1294_vm13, %vm1295_vm12  ;;  %v2903_v20 = vor.u32 %v3201_v18, %v2900_v1  ;;  %v2811_v11 = vor.u32 %v3180_v9, %v2810_v8  ;;  %v3211_v8 = vld [vmem:[%s3603_s9] sm:$0xff] }
 0x1cf   :  { %v1291_v24 = vsub.f32 1.0, %v1290_v22  ;;  %v1312_v25 = vsel %vm1311_vm10, %v3248_v16, %v1308_v2  ;;  %v2898_v16 = vld [vmem:[#allocation8 + $0xb0] sm:$0xf]  ;;  %1837 = vmatpush.bf16.msra.mxu0 %v2855_v15  ;;  %v3188_v22 = vld [vmem:[#allocation8 + $0x44] sm:$0xf0]  ;;  %v2815_v15 = vor.u32 %v3179_v10, %v2812_v12 }
 0x1d0   :  { %v1317_v13 = vsel %vm1314_vm11, %v1316_v23, %v1312_v25  ;;  %v2899_v19 = vor.u32 %v3202_v17, %v2898_v16  ;;  %v3187_v2 = vld [vmem:[#allocation8 + $0x44] sm:$0xf]  ;;  %1852 = vmatpush.bf16.msra.mxu1 %v2903_v20 }
 0x1d1   :  { %v1320_v28 = vpack.c.bf16 %v1317_v13, %v1317_v13  ;;  %v1292_v30 = vmul.f32 %v3250_v21, %v1291_v24  ;;  %v2844_v24 = vld [vmem:[#allocation8 + $0x48] sm:$0xf0]  ;;  %v2890_v13 = vld [vmem:[#allocation8 + $0xa0] sm:$0xf] }
 0x1d2   :  { %1826 = vmatpush.bf16.msrb.mxu3 %v2899_v19  ;;  %v2847_v25 = vor.u32 %v3187_v2, %v2844_v24 }
 0x1d3   :  { %1540 = vmatmul.bf16.vlgmr.msra.gmra.mxu3 %v1320_v28  ;;  %1566 = vmatmul.bf16.vlgmr.msrb.gmra.mxu1 %v1320_v28  ;;  %v1293_v33 = vadd.f32 %v3250_v21, %v1292_v30  ;;  %v3199_v28 = vld [vmem:[#allocation8 + $0xa4] sm:$0xf]  ;;  %v2891_v30 = vor.u32 %v3200_v26, %v2890_v13 }
 0x1d4   :  { %1838 = vmatpush.bf16.msra.mxu0 %v2847_v25 }
 0x1d5   :  { %v1297_v35 = vsel %vm1296_vm14, %v3250_v21, %v1293_v33  ;;  %v2842_v21 = vld [vmem:[#allocation8 + $0x40] sm:$0xf]  ;;  %v2895_v33 = vor.u32 %v3199_v28, %v2892_v31 }
 0x1d6   :  { %v1302_v36 = vsel %vm1299_vm15, %v1301_v34, %v1297_v35  ;;  %v2843_v23 = vor.u32 %v3188_v22, %v2842_v21  ;;  %v2834_v34 = vld [vmem:[#allocation8 + $0x30] sm:$0xf]  ;;  %v3186_v35 = vld [vmem:[#allocation8 + $0x34] sm:$0xf0]  ;;  %1827 = vmatpush.bf16.msrb.mxu3 %v2891_v30 }
 0x1d7   :  { %v1319_v37 = vpack.c.bf16 %v1302_v36, %v1302_v36  ;;  %v3185_v36 = vld [vmem:[#allocation8 + $0x34] sm:$0xf]  ;;  %v2835_v55 = vor.u32 %v3186_v35, %v2834_v34  ;;  %1853 = vmatpush.bf16.msra.mxu1 %v2895_v33 }
 0x1d8   :  { %1812 = vmatpush.bf16.msrb.mxu2 %v2843_v23  ;;  %v2839_v39 = vor.u32 %v3185_v36, %v2836_v38 }
 0x1d9   :  { %1527 = vmatmul.bf16.vlgmr.msra.gmra.mxu2 %v1319_v37  ;;  %1553 = vmatmul.bf16.vlgmr.msrb.gmra.mxu0 %v1319_v37  ;;  %v1353_v37 = vld [vmem:[%s3600_s6] sm:$0x3] }
 0x1da   :  { %1839 = vmatpush.bf16.msra.mxu0 %v2839_v39  ;;  %v1356_v49 = vperm.slane %v1353_v37, 1  ;;  %1828 = vmatpush.bf16.msrb.mxu3 %v2883_v43  ;;  %v1355_v54 = vperm.slane %v1353_v37, 0 }
 0x1db   :  { %1854 = vmatpush.bf16.msra.mxu1 %v2887_v45 }
 0x1dc   :  { %1813 = vmatpush.bf16.msrb.mxu2 %v2835_v55 }
 0x1de   :  { %1840 = vmatpush.bf16.msra.mxu0 %v2831_v52  ;;  %1829 = vmatpush.bf16.msrb.mxu3 %v2875_v29  ;;  %v3223_v52 = vld [vmem:[%s3603_s9 + $0x60] sm:$0xff]  ;;  %v3221_v29 = vld [vmem:[%s3603_s9 + $0x50] sm:$0xff] }
 0x1df   :  { %1855 = vmatpush.bf16.msra.mxu1 %v2879_v62  ;;  %v3213_v62 = vld [vmem:[%s3603_s9 + $0x10] sm:$0xff] }
 0x1e0   :  { %1814 = vmatpush.bf16.msrb.mxu2 %v2827_v50  ;;  %v3224_v50 = vld [vmem:[%s3603_s9 + $0x68] sm:$0xff] }
 0x1e2   :  { %1841 = vmatpush.bf16.msra.mxu0 %v2823_v5  ;;  %2046 = vmatpush.bf16.msra.mxu3 %v3226_v47 }
 0x1e4   :  { %1815 = vmatpush.bf16.msrb.mxu2 %v2819_v63  ;;  %v3219_v63 = vld [vmem:[%s3603_s9 + $0x40] sm:$0xff] }
 0x1e6   :  { %1842 = vmatpush.bf16.msra.mxu0 %v2815_v15  ;;  %2047 = vmatpush.bf16.msra.mxu3 %v3225_v48 }
 0x1e8   :  { %1816 = vmatpush.bf16.msrb.mxu2 %v2811_v11 }
 0x1ea   :  { %2048 = vmatpush.bf16.msra.mxu3 %v3224_v50 }
 0x1ee   :  { %2049 = vmatpush.bf16.msra.mxu3 %v3223_v52 }
 0x1f2   :  { %2050 = vmatpush.bf16.msra.mxu3 %v3222_v56 }
 0x1f6   :  { %2051 = vmatpush.bf16.msra.mxu3 %v3221_v29 }
 0x250   :  { %v1567_v27 = vpop.f32.mrf.mxu1 }
 0x256   :  { %v1541_v60 = vpop.f32.mrf.mxu3  ;;  %v1554_v61 = vpop.f32.mrf.mxu0 }
 0x257   :  { %v1555_v4 = vadd.f32 %v1554_v61, %v1356_v49  ;;  %v3218_v49 = vld [vmem:[%s3603_s9 + $0x38] sm:$0xff]  ;;  %v1646_v61 = vperm.slane %v1643_v59, 1 }
 0x258   :  { %v1569_v6 = vpop.f32.mrf.mxu1  ;;  %2033 = vmatpush.bf16.msra.mxu2 %v3218_v49 }
 0x259   :  { %v1568_v7 = vadd.f32 %v1567_v27, %v1555_v4 }
 0x25b   :  { %v2807_v14 = vmul.f32 -1.442695, %v1568_v7  ;;  %v1645_v7 = vperm.slane %v1643_v59, 0 }
 0x25c   :  { %v1528_v16 = vpop.f32.mrf.mxu2  ;;  %2034 = vmatpush.bf16.msra.mxu2 %v3217_v51 }
 0x25d   :  { %3251 = vpow2.f32 %v2807_v14  ;;  %v1529_v17 = vadd.f32 %v1528_v16, %v1355_v54 }
 0x25e   :  { %v1543_v18 = vpop.f32.mrf.mxu3  ;;  %v1556_v19 = vpop.f32.mrf.mxu0 }
 0x25f   :  { %v1542_v1 = vadd.f32 %v1541_v60, %v1529_v17  ;;  %v3220_v60 = vld [vmem:[%s3603_s9 + $0x48] sm:$0xff] }
 0x260   :  { %2035 = vmatpush.bf16.msra.mxu2 %v3216_v53  ;;  %2052 = vmatpush.bf16.msra.mxu3 %v3220_v60 }
 0x261   :  { %v2806_v20 = vmul.f32 -1.442695, %v1542_v1 }
 0x263   :  { %v3252_v21 = vpop.eup %3251  ;;  %3253 = vpow2.f32 %v2806_v20 }
 0x264   :  { %v1578_v22 = vadd.f32 1.0, %v3252_v21  ;;  %v1530_v2 = vpop.f32.mrf.mxu2  ;;  %2036 = vmatpush.bf16.msra.mxu2 %v3215_v57  ;;  %2053 = vmatpush.bf16.msra.mxu3 %v3219_v63 }
 0x266   :  { %3255 = vrcp.f32 %v1578_v22  ;;  %v1605_v28 = vand.u32 2147483648, %v1578_v22  ;;  %v1603_v31 = vand.u32 2147483647, %v1578_v22  ;;  %vm1599_vm1 = vweird.f32 %v1578_v22 }
 0x268   :  { %v1606_v36 = vor.u32 1.1754944e-38, %v1605_v28  ;;  %vm1604_vm3 = vcmp.eq.f32.partialorder %v1603_v31, 8.507059e+37  ;;  %2037 = vmatpush.bf16.msra.mxu2 %v3214_v58 }
 0x269   :  { %v3254_v23 = vpop.eup %3253 }
 0x26a   :  { %v1577_v24 = vadd.f32 1.0, %v3254_v23 }
 0x26c   :  { %v3256_v25 = vpop.eup %3255  ;;  %3257 = vrcp.f32 %v1577_v24  ;;  %v1590_v27 = vand.u32 2147483648, %v1577_v24  ;;  %v1588_v41 = vand.u32 2147483647, %v1577_v24  ;;  %vm1584_vm5 = vweird.f32 %v1577_v24  ;;  %2038 = vmatpush.bf16.msra.mxu2 %v3213_v62 }
 0x26d   :  { %v1595_v13 = vmul.f32 %v3256_v25, %v1578_v22  ;;  %vm1600_vm0 = vweird.f32 %v3256_v25 }
 0x26e   :  { %vm1601_vm2 = vmor %vm1599_vm1, %vm1600_vm0  ;;  %v1591_v43 = vor.u32 1.1754944e-38, %v1590_v27  ;;  %vm1589_vm7 = vcmp.eq.f32.partialorder %v1588_v41, 8.507059e+37 }
 0x26f   :  { %v1596_v26 = vsub.f32 1.0, %v1595_v13 }
 0x270   :  { %2039 = vmatpush.bf16.msra.mxu2 %v3212_v0 }
 0x271   :  { %v1597_v30 = vmul.f32 %v3256_v25, %v1596_v26 }
 0x272   :  { %v3258_v33 = vpop.eup %3257 }
 0x273   :  { %v1580_v34 = vmul.f32 %v3258_v33, %v1577_v24  ;;  %v1598_v35 = vadd.f32 %v3256_v25, %v1597_v30  ;;  %vm1585_vm4 = vweird.f32 %v3258_v33 }
 0x274   :  { %vm1586_vm6 = vmor %vm1584_vm5, %vm1585_vm4  ;;  %2040 = vmatpush.bf16.msra.mxu2 %v3211_v8 }
 0x275   :  { %v1581_v37 = vsub.f32 1.0, %v1580_v34  ;;  %v1602_v55 = vsel %vm1601_vm2, %v3256_v25, %v1598_v35 }
 0x276   :  { %v1607_v38 = vsel %vm1604_vm3, %v1606_v36, %v1602_v55 }
 0x277   :  { %v1610_v39 = vpack.c.bf16 %v1607_v38, %v1607_v38  ;;  %v1582_v40 = vmul.f32 %v3258_v33, %v1581_v37 }
 0x279   :  { %1830 = vmatmul.bf16.vlgmr.msrb.gmra.mxu3 %v1610_v39  ;;  %1856 = vmatmul.bf16.vlgmr.msra.gmra.mxu1 %v1610_v39  ;;  %v1583_v42 = vadd.f32 %v3258_v33, %v1582_v40 }
 0x27b   :  { %v1587_v44 = vsel %vm1586_vm6, %v3258_v33, %v1583_v42 }
 0x27c   :  { %v1592_v45 = vsel %vm1589_vm7, %v1591_v43, %v1587_v44  ;;  %v3234_v43 = vld [vmem:[%s3604_s10] ss:$0 sm:$0xff] }
 0x27d   :  { %v1609_v46 = vpack.c.bf16 %v1592_v45, %v1592_v45 }
 0x27f   :  { %1817 = vmatmul.bf16.vlgmr.msrb.gmra.mxu2 %v1609_v46  ;;  %1843 = vmatmul.bf16.vlgmr.msra.gmra.mxu0 %v1609_v46 }
 0x2f6   :  { %v1857_v32 = vpop.f32.mrf.mxu1 }
 0x2fc   :  { %v1831_v3 = vpop.f32.mrf.mxu3  ;;  %v1844_v4 = vpop.f32.mrf.mxu0 }
 0x2fd   :  { %v1845_v5 = vadd.f32 %v1844_v4, %v1646_v61 }
 0x2fe   :  { %v1859_v6 = vpop.f32.mrf.mxu1 }
 0x2ff   :  { %v1858_v54 = vadd.f32 %v1857_v32, %v1845_v5 }
 0x301   :  { %v2937_v9 = vmul.f32 -1.442695, %v1858_v54 }
 0x302   :  { %v1818_v10 = vpop.f32.mrf.mxu2 }
 0x303   :  { %3259 = vpow2.f32 %v2937_v9  ;;  %v1819_v11 = vadd.f32 %v1818_v10, %v1645_v7 }
 0x304   :  { %v1833_v12 = vpop.f32.mrf.mxu3  ;;  %v1846_v14 = vpop.f32.mrf.mxu0 }
 0x305   :  { %v1832_v15 = vadd.f32 %v1831_v3, %v1819_v11 }
 0x307   :  { %v2936_v16 = vmul.f32 -1.442695, %v1832_v15 }
 0x309   :  { %v3260_v17 = vpop.eup %3259  ;;  %3261 = vpow2.f32 %v2936_v16 }
 0x30a   :  { %v1868_v18 = vadd.f32 1.0, %v3260_v17  ;;  %v1820_v19 = vpop.f32.mrf.mxu2 }
 0x30c   :  { %3263 = vrcp.f32 %v1868_v18  ;;  %v1895_v23 = vand.u32 2147483648, %v1868_v18  ;;  %v1893_v25 = vand.u32 2147483647, %v1868_v18  ;;  %vm1889_vm9 = vweird.f32 %v1868_v18 }
 0x30e   :  { %v1896_v30 = vor.u32 1.1754944e-38, %v1895_v23  ;;  %vm1894_vm11 = vcmp.eq.f32.partialorder %v1893_v25, 8.507059e+37 }
 0x30f   :  { %v3262_v1 = vpop.eup %3261 }
 0x310   :  { %v1867_v20 = vadd.f32 1.0, %v3262_v1 }
 0x312   :  { %v3264_v21 = vpop.eup %3263  ;;  %3265 = vrcp.f32 %v1867_v20  ;;  %v1880_v35 = vand.u32 2147483648, %v1867_v20  ;;  %v1878_v55 = vand.u32 2147483647, %v1867_v20  ;;  %vm1874_vm13 = vweird.f32 %v1867_v20 }
 0x313   :  { %v1885_v22 = vmul.f32 %v3264_v21, %v1868_v18  ;;  %vm1890_vm8 = vweird.f32 %v3264_v21 }
 0x314   :  { %vm1891_vm10 = vmor %vm1889_vm9, %vm1890_vm8  ;;  %v1881_v27 = vor.u32 1.1754944e-38, %v1880_v35  ;;  %vm1879_vm15 = vcmp.eq.f32.partialorder %v1878_v55, 8.507059e+37 }
 0x315   :  { %v1886_v2 = vsub.f32 1.0, %v1885_v22 }
 0x317   :  { %v1887_v24 = vmul.f32 %v3264_v21, %v1886_v2 }
 0x318   :  { %v3266_v13 = vpop.eup %3265 }
 0x319   :  { %v1870_v26 = vmul.f32 %v3266_v13, %v1867_v20  ;;  %v1888_v28 = vadd.f32 %v3264_v21, %v1887_v24  ;;  %vm1875_vm12 = vweird.f32 %v3266_v13 }
 0x31a   :  { %vm1876_vm14 = vmor %vm1874_vm13, %vm1875_vm12 }
 0x31b   :  { %v1871_v31 = vsub.f32 1.0, %v1870_v26  ;;  %v1892_v33 = vsel %vm1891_vm10, %v3264_v21, %v1888_v28 }
 0x31c   :  { %v1897_v34 = vsel %vm1894_vm11, %v1896_v30, %v1892_v33 }
 0x31d   :  { %v1900_v36 = vpack.c.bf16 %v1897_v34, %v1897_v34  ;;  %v1872_v37 = vmul.f32 %v3266_v13, %v1871_v31 }
 0x31f   :  { %2054 = vmatmul.bf16.vlgmr.msra.gmra.mxu3 %v1900_v36  ;;  %v1873_v38 = vadd.f32 %v3266_v13, %v1872_v37 }
 0x321   :  { %v1877_v39 = vsel %vm1876_vm14, %v3266_v13, %v1873_v38 }
 0x322   :  { %v1882_v40 = vsel %vm1879_vm15, %v1881_v27, %v1877_v39 }
 0x323   :  { %v1899_v41 = vpack.c.bf16 %v1882_v40, %v1882_v40 }
 0x325   :  { %2041 = vmatmul.bf16.vlgmr.msra.gmra.mxu2 %v1899_v41 }
 0x3a2   :  { %v2055_v42 = vpop.f32.mrf.mxu3 }
 0x3a8   :  { %v2042_v44 = vpop.f32.mrf.mxu2 }
 0x3a9   :  { %v2043_v45 = vadd.f32 %v3234_v43, %v2042_v44 }
 0x3aa   :  { %v2057_v46 = vpop.f32.mrf.mxu3 }
 0x3ab   :  { %v2056_v47 = vadd.f32 %v2055_v42, %v2043_v45 }
 0x3ad   :  { %v3002_v48 = vmul.f32 -1.442695, %v2056_v47 }
 0x3af   :  { %3267 = vpow2.f32 %v3002_v48 }
 0x3b0   :  { %v2044_v49 = vpop.f32.mrf.mxu2 }
 0x3b5   :  { %v3268_v50 = vpop.eup %3267 }
 0x3b6   :  { %v2062_v51 = vadd.f32 1.0, %v3268_v50 }
 0x3b8   :  { %3269 = vrcp.f32 %v2062_v51  ;;  %v2074_v57 = vand.u32 2147483648, %v2062_v51  ;;  %v2072_v58 = vand.u32 2147483647, %v2062_v51  ;;  %vm2068_vm1 = vweird.f32 %v2062_v51 }
 0x3ba   :  { %v2075_v59 = vor.u32 1.1754944e-38, %v2074_v57  ;;  %vm2073_vm3 = vcmp.eq.f32.partialorder %v2072_v58, 8.507059e+37 }
 0x3be   :  { %v3270_v52 = vpop.eup %3269 }
 0x3bf   :  { %v2064_v53 = vmul.f32 %v3270_v52, %v2062_v51  ;;  %vm2069_vm0 = vweird.f32 %v3270_v52 }
 0x3c0   :  { %vm2070_vm2 = vmor %vm2068_vm1, %vm2069_vm0 }
 0x3c1   :  { %v2065_v56 = vsub.f32 1.0, %v2064_v53 }
 0x3c3   :  { %v2066_v29 = vmul.f32 %v3270_v52, %v2065_v56 }
 0x3c5   :  { %v2067_v32 = vadd.f32 %v3270_v52, %v2066_v29 }
 0x3c7   :  { %v2071_v60 = vsel %vm2070_vm2, %v3270_v52, %v2067_v32 }
 0x3c8   :  { %v2076_v61 = vsel %vm2073_vm3, %v2075_v59, %v2071_v60 }
 0x3c9   :  { %2078 = vst [vmem:[#allocation10] sm:$0xff] %v2076_v61 }
 0x3ca   :  { %2089 = dma.vmem_to_hbm [thread:$0]  %s2085_s14, 128, %s2087_s16, [#allocation4]  }
 0x3cb   :  { %3397 = dma.done.wait [#allocation4], 128  }
 0x3cc   :  { %3398 = vsyncadd [#allocation4], 4294967168 }
 0x3cd   :  { %2094 = vsyncpa [#allocation3], 1 }
 0x3ce   :  { %2095 = vsyncpa [#allocation6], 1 }
 0x3cf   :  { %2096 = vsyncpa [#allocation9], 1 }
 0x3d0   :  { %2097 = vsyncpa [#allocation4], 1 }

</bundles_post_ra>
